<compile_context>
chip_gen: v5e
topology: v5e:2x2
jax: 0.10.0
libtpu: 0.0.40
codegen_flags: <defaults>
</compile_context>

<pallas_src>
import jax
import jax.numpy as jnp
from jax.experimental import pallas as pl
from jax.experimental.pallas import tpu as pltpu


def _transpose_kernel(x_ref, o_ref):
    # x_ref: (G, S, D) tile in VMEM;  o_ref: (G, D, S) tile in VMEM.
    # Per-head transpose of the last two dims (runs on the XLU).
    # Kept as a single batched swapaxes; switch to an unrolled per-head
    # lax.fori_loop only if bundle dumps show spill vld/vst traffic.
    o_ref[...] = jnp.swapaxes(x_ref[...], 1, 2)


def _inner_steps_per_core() -> int:
    """Sequential ('arbitrary') grid steps each TensorCore should run.

    v7x has 2 TensorCores per chip; with a single parallel axis of size 2 each
    core would execute exactly one grid step, i.e. zero software pipelining
    inside a core.  k=3 restores DMA/compute/writeback overlap per core.
    On single-TC parts (v5e/v6e) extra steps only add ~0.35us each, so k=1.
    """
    try:
        kind = jax.devices()[0].device_kind.lower()
    except Exception:
        return 1
    if "7" in kind:   # TPU v7x (2 TensorCores / chip)
        return 3
    return 1          # v5e / v6e / unknown: grid=(2,) is already near roofline


def transpose_last_two(x: jax.Array) -> jax.Array:
    """Equivalent of torch `x.transpose(-1, -2)` for a 4-D array (B, H, S, D)."""
    B, H, S, D = x.shape
    BH = B * H
    x_flat = x.reshape(BH, S, D)          # free view: collapse leading dims

    # Grid layout: axis 0 ("parallel") shards heads across the (up to) two
    # TensorCores; axis 1 ("arbitrary") gives each core k pipelined steps.
    n_par = 2 if BH >= 2 else 1
    k = _inner_steps_per_core()
    # Never pad more than one extra head (padding is real HBM traffic).
    while k > 1 and pl.cdiv(BH, n_par * k) * (n_par * k) - BH > 1:
        k -= 1
    blocks = n_par * k
    BH_pad = pl.cdiv(BH, blocks) * blocks
    if BH_pad != BH:                      # odd head counts: keep the 2-way split
        x_flat = jnp.pad(x_flat, ((0, BH_pad - BH), (0, 0), (0, 0)))
    G = BH_pad // blocks                  # heads per grid step

    itemsize = jnp.dtype(x.dtype).itemsize
    cost = pl.CostEstimate(
        flops=0,
        transcendentals=0,
        bytes_accessed=2 * BH_pad * S * D * itemsize,   # read + write
    )

    index_map = lambda c, j, _k=k: (c * _k + j, 0, 0)

    out_flat = pl.pallas_call(
        _transpose_kernel,
        out_shape=jax.ShapeDtypeStruct((BH_pad, D, S), x.dtype),
        grid_spec=pl.GridSpec(
            grid=(n_par, k),
            in_specs=[
                # Last two block dims equal the full array dims -> (8,128) rule OK.
                pl.BlockSpec((G, S, D), index_map),
            ],
            # Output last dim = S (full, multiple of 128) -> unmasked, lane-dense vst.
            out_specs=pl.BlockSpec((G, D, S), index_map),
        ),
        compiler_params=pltpu.CompilerParams(
            dimension_semantics=("parallel", "arbitrary"),
        ),
        cost_estimate=cost,
    )(x_flat)

    if BH_pad != BH:
        out_flat = out_flat[:BH]
    return out_flat.reshape(B, H, D, S)


if __name__ == "__main__":
    key = jax.random.PRNGKey(0)
    # Shapes matching the PyTorch module: x190 = randn(1, 12, 384, 64).
    B, H, S, D = 1, 12, 384, 64
    x = jax.random.normal(key, (B, H, S, D), dtype=jnp.float32)

    out = transpose_last_two(x)
    jax.block_until_ready(out)

    # Verify against plain JAX reference (same semantics as torch.transpose(-1, -2)).
    ref = jnp.swapaxes(x, -1, -2)
    assert out.shape == (B, H, D, S), out.shape
    assert jnp.array_equal(out, ref), "mismatch vs reference transpose"

    print("KERNEL_OK")
</pallas_src>

<mosaic_0001>
module attributes {stable_mosaic.version = 11 : i64} {
  func.func @_transpose_kernel(%arg0: i32, %arg1: i32, %arg2: memref<6x384x64xf32, #tpu.memory_space<vmem>>, %arg3: memref<6x64x384xf32, #tpu.memory_space<vmem>>) attributes {dimension_semantics = [#tpu.dimension_semantics<parallel>, #tpu.dimension_semantics<arbitrary>], iteration_bounds = array<i64: 2, 1>, scalar_prefetch = 0 : i64, scratch_operands = 0 : i64, tpu.core_type = #tpu.core_type<tc>, window_params = [{transform_indices = @transform_0, window_bounds = array<i64: 6, 384, 64>}, {transform_indices = @transform_1, window_bounds = array<i64: 6, 64, 384>}]} {
    %c0 = arith.constant 0 : index
    %c0_0 = arith.constant 0 : index
    %c0_1 = arith.constant 0 : index
    %0 = vector.load %arg2[%c0, %c0_0, %c0_1] : memref<6x384x64xf32, #tpu.memory_space<vmem>>, vector<6x384x64xf32>
    %1 = tpu.transpose %0, [0, 2, 1] : vector<6x384x64xf32> -> vector<6x64x384xf32>
    %c0_2 = arith.constant 0 : index
    %c0_3 = arith.constant 0 : index
    %c0_4 = arith.constant 0 : index
    %2 = vector.load %arg3[%c0_2, %c0_3, %c0_4] : memref<6x64x384xf32, #tpu.memory_space<vmem>>, vector<6x64x384xf32>
    tpu.vector_store %arg3[%c0_2, %c0_3, %c0_4], %1 {strides = array<i32>} : memref<6x64x384xf32, #tpu.memory_space<vmem>>, vector<6x64x384xf32>,
    return
  }
  func.func @transform_0(%arg0: i32, %arg1: i32) -> (i32, i32, i32) {
    %c1_i32 = arith.constant 1 : i32
    %0 = arith.muli %arg0, %c1_i32 : i32
    %1 = arith.addi %0, %arg1 : i32
    %c0_i32 = arith.constant 0 : i32
    %c0_i32_0 = arith.constant 0 : i32
    %c0_i32_1 = arith.constant 0 : i32
    return %1, %c0_i32, %c0_i32_0 : i32, i32, i32
  }
  func.func @transform_1(%arg0: i32, %arg1: i32) -> (i32, i32, i32) {
    %c1_i32 = arith.constant 1 : i32
    %0 = arith.muli %arg0, %c1_i32 : i32
    %1 = arith.addi %0, %arg1 : i32
    %c0_i32 = arith.constant 0 : i32
    %c0_i32_0 = arith.constant 0 : i32
    %c0_i32_1 = arith.constant 0 : i32
    return %1, %c0_i32, %c0_i32_0 : i32, i32, i32
  }
}

</mosaic_0001>

<bundles_post_ra>
// kernel: tpu_custom_call.1
= control target key start
LH: loop header
LB: loop body
LE: loop exit
PB: predicated region body
PF: predicated region fallthrough
CT: control target
= control target key end

     0   :  { %6 = vsyncpa [#allocation3], 0  ;;  %s1939_s0 = inlined_call_operand.vmem [shape: f32[12,384,64], index: 0, kind: input, shape index: {}]   ;;  %s1940_s1 = inlined_call_operand.hbm [shape: f32[12,64,384], index: 1, kind: output, shape index: {}]  }
   0x1   :  { %8 = vsyncpa [#allocation3 + $0x1], 0  ;;  %s1402_s6 = smov 0   ;;  %s1404_s7 = smov 0  }
   0x2   :  { %s1406_s8 = smov 0   ;;  %s1408_s9 = smov 0  }
   0x3   :  { %s1410_s10 = smov 0   ;;  %s1412_s11 = smov 0  }
   0x4 LB: > { %s1240_s12 = sadd.s32 4294967295, %s1388_s11   ;;  %s1241_s13 = sadd.s32 4294967294, %s1388_s11   ;;  %s1388_s11 = sphi %s1412_s11, %s14_s11   ;;  %s1384_s10 = sphi %s1410_s10, %s1947_s10   ;;  %s1380_s9 = sphi %s1408_s9, %s1946_s9   ;;  %s1376_s8 = sphi %s1406_s8, %s1945_s8   ;;  %s1372_s7 = sphi %s1404_s7, %s1944_s7   ;;  %s1368_s6 = sphi %s1402_s6, %s1943_s6  }
   0x5   : > { %s26_s14 = sadd.s32 1, %s1384_s10  ;;  %s63_s15 = sadd.s32 1, %s1376_s8 }
   0x6   : > { %p28_p0 = scmp.ge.s32.totalorder %s26_s14, 2  ;;  %p73_p1 = scmp.ne.s32.totalorder %s1376_s8, %s1372_s7 }
   0x7   : > { %p74_p2 = scmp.eq.s32.totalorder %s1240_s12, 1  ;;  %p79_p3 = scmp.ne.s32.totalorder %s1372_s7, %s1368_s6 }
   0x8   : > { %s1949_s14 = smov (%p28_p0, %s26_s14), 0  ;;  %p80_p5 = scmp.eq.s32.totalorder %s1241_s13, 1 }
   0x9   : > { %p1442_p4 = por %p74_p2, %p73_p1  ;;  %s60_s17 = ssub.s32 %s1384_s10, %s1949_s14 }
   0xa   : > { %p1244_p6 = scmp.ge.s32.totalorder %s1388_s11, 1  ;;  %p61_p7 = scmp.eq.s32.totalorder %s60_s17, 0 }
   0xb   : > { %p1449_p8 = por %p80_p5, %p79_p3  ;;  %p110_p9 = scmp.lt.s32.totalorder %s1388_s11, 3 }
   0xc   : > { %s1455_s19 = scalar_select %p61_p7, %s1376_s8, %s63_s15  }
   0xd   : > { %p111_p10 = pnand %p1244_p6, %p110_p9 }
   0xe   : > { %s133_s20 = smul.u32 (!%p111_p10), 6, %s1380_s9  ;;  %s129_s25 = sand.u32 (!%p111_p10), 1, %s1372_s7  }
   0xf   : > { %114 = sbr.rel (%p111_p10) target bundleno = 891 (0x37b), region = 24  ;;  %s1152_s5 = scalar_lea.sflag (!%p111_p10), [#allocation3], %s129_s25 }
  0x10   : > { %p134_p11 = scmp.lt.s32.totalorder (!%p111_p10), %s133_s20, 11  ;;  %s1249_s26 = smul.u32 (!%p111_p10), 1152, %s129_s25 }
  0x11   : > { %s1258_s28 = smul.u32 (!%p111_p10), 1152, %s1380_s9  ;;  %s1330_s17 = scalar_lea.hbm (!%p111_p10), %s1940_s1, 2304 }
  0x12   : > { %s1637_s27 = scalar_lea.vmem (!%p111_p10), [#allocation2], %s1249_s26 }
  0x13   : > { %s1165_s2 = scalar_lea.hbm (!%p111_p10), %s1940_s1, %s1258_s28  ;;  %s1166_s3 = sshll.u32 (!%p111_p10), %s1637_s27, 4  ;;  %s1167_s3 = int_to_ptr.vmem [resolvable:$true] %s1166_s3 }
  0x14   : > { %s1951_s20 = smov (!%p134_p11, %s133_s20), 11  ;;  %s1168_s4 = sshll.u32 %s1165_s2, 4  ;;  %s1169_s4 = int_to_ptr.hbm [resolvable:$true] %s1168_s4 }
  0x15   : > { %s1250_s21 = smul.u32 384, %s1951_s20  ;;  %s1324_s9 = sshra.s32 %s1169_s4, 4  ;;  %s1325_s9 = int_to_ptr.hbm [resolvable:$true] %s1324_s9 }
  0x16   : > { %s1326_s12 = scalar_lea.hbm %s1325_s9, 1152  ;;  %p1331_p1 = scmp.lt.s32.totalorder %s1325_s9, %s1940_s1 }
  0x17   : > { %s1461_s24 = scalar_lea.vmem %s1939_s0, %s1250_s21  ;;  %p1327_p12 = scmp.ne.s32.totalorder %s1325_s9, %s1326_s12 }
  0x18   : > { %v159_v0 = vld [vmem:[%s1461_s24 + $0x80] sm:$0xff]  ;;  %v160_v3 = vld [vmem:[%s1461_s24 + $0x88] sm:$0xff]  ;;  %v161_v6 = vld [vmem:[%s1461_s24 + $0x90] sm:$0xff]  ;;  %p1332_p2 = scmp.lt.s32.totalorder %s1330_s17, %s1326_s12 }
  0x19   : > { %v143_v1 = vld [vmem:[%s1461_s24] sm:$0xff]  ;;  %463 = vxpose.xlu1.b32.start [1/16] (narrow) %v159_v0, 64  ;;  %v144_v4 = vld [vmem:[%s1461_s24 + $0x8] sm:$0xff]  ;;  %v145_v7 = vld [vmem:[%s1461_s24 + $0x10] sm:$0xff]  ;;  %p1328_p13 = pnand %p1327_p12, %p1442_p4 }
  0x1a   : > { %431 = vxpose.xlu0.b32.start [1/16] (narrow) %v143_v1, 64  ;;  %v175_v2 = vld [vmem:[%s1461_s24 + $0x100] sm:$0xff]  ;;  %v176_v5 = vld [vmem:[%s1461_s24 + $0x108] sm:$0xff]  ;;  %v177_v8 = vld [vmem:[%s1461_s24 + $0x110] sm:$0xff]  ;;  %p1333_p3 = por %p1332_p2, %p1331_p1 }
  0x1b   : > { %495 = vxpose.xlu2.b32.start [1/16] (narrow) %v175_v2, 64  ;;  %v162_v9 = vld [vmem:[%s1461_s24 + $0x98] sm:$0xff]  ;;  %v163_v12 = vld [vmem:[%s1461_s24 + $0xa0] sm:$0xff]  ;;  %v164_v15 = vld [vmem:[%s1461_s24 + $0xa8] sm:$0xff]  ;;  %p1329_p0 = pneg %p1328_p13 }
  0x1c   : > { %v146_v10 = vld [vmem:[%s1461_s24 + $0x18] sm:$0xff]  ;;  %v147_v13 = vld [vmem:[%s1461_s24 + $0x20] sm:$0xff]  ;;  %v148_v16 = vld [vmem:[%s1461_s24 + $0x28] sm:$0xff] }
  0x1d   : > { %v178_v11 = vld [vmem:[%s1461_s24 + $0x118] sm:$0xff]  ;;  %v179_v14 = vld [vmem:[%s1461_s24 + $0x120] sm:$0xff]  ;;  %v180_v17 = vld [vmem:[%s1461_s24 + $0x128] sm:$0xff]  ;;  %p1334_p5 = pnand %p1333_p3, %p1329_p0 }
  0x1e   : > { %v165_v18 = vld [vmem:[%s1461_s24 + $0xb0] sm:$0xff]  ;;  %v166_v21 = vld [vmem:[%s1461_s24 + $0xb8] sm:$0xff]  ;;  %v167_v24 = vld [vmem:[%s1461_s24 + $0xc0] sm:$0xff] }
  0x1f   : > { %v149_v19 = vld [vmem:[%s1461_s24 + $0x30] sm:$0xff]  ;;  %v150_v22 = vld [vmem:[%s1461_s24 + $0x38] sm:$0xff]  ;;  %v151_v25 = vld [vmem:[%s1461_s24 + $0x40] sm:$0xff] }
  0x20   : > { %v181_v20 = vld [vmem:[%s1461_s24 + $0x130] sm:$0xff]  ;;  %v182_v23 = vld [vmem:[%s1461_s24 + $0x138] sm:$0xff]  ;;  %v183_v26 = vld [vmem:[%s1461_s24 + $0x140] sm:$0xff] }
  0x21   : > { %464 = vxpose.xlu1.b32.cont [2/16] (narrow) %v160_v3, 64  ;;  %v168_v27 = vld [vmem:[%s1461_s24 + $0xc8] sm:$0xff]  ;;  %v169_v30 = vld [vmem:[%s1461_s24 + $0xd0] sm:$0xff]  ;;  %v170_v33 = vld [vmem:[%s1461_s24 + $0xd8] sm:$0xff] }
  0x22   : > { %432 = vxpose.xlu0.b32.cont [2/16] (narrow) %v144_v4, 64  ;;  %v152_v28 = vld [vmem:[%s1461_s24 + $0x48] sm:$0xff]  ;;  %v153_v31 = vld [vmem:[%s1461_s24 + $0x50] sm:$0xff]  ;;  %v154_v34 = vld [vmem:[%s1461_s24 + $0x58] sm:$0xff] }
  0x23   : > { %496 = vxpose.xlu2.b32.cont [2/16] (narrow) %v176_v5, 64  ;;  %v184_v29 = vld [vmem:[%s1461_s24 + $0x148] sm:$0xff]  ;;  %v185_v32 = vld [vmem:[%s1461_s24 + $0x150] sm:$0xff]  ;;  %v186_v35 = vld [vmem:[%s1461_s24 + $0x158] sm:$0xff] }
  0x24   : > { %v171_v36 = vld [vmem:[%s1461_s24 + $0xe0] sm:$0xff]  ;;  %v172_v39 = vld [vmem:[%s1461_s24 + $0xe8] sm:$0xff]  ;;  %v173_v42 = vld [vmem:[%s1461_s24 + $0xf0] sm:$0xff] }
  0x25   : > { %v155_v37 = vld [vmem:[%s1461_s24 + $0x60] sm:$0xff]  ;;  %v156_v40 = vld [vmem:[%s1461_s24 + $0x68] sm:$0xff]  ;;  %v157_v43 = vld [vmem:[%s1461_s24 + $0x70] sm:$0xff] }
  0x26   : > { %v187_v38 = vld [vmem:[%s1461_s24 + $0x160] sm:$0xff]  ;;  %v188_v41 = vld [vmem:[%s1461_s24 + $0x168] sm:$0xff]  ;;  %v189_v44 = vld [vmem:[%s1461_s24 + $0x170] sm:$0xff] }
  0x27   : > { %v174_v45 = vld [vmem:[%s1461_s24 + $0xf8] sm:$0xff]  ;;  %v207_v48 = vld [vmem:[%s1461_s24 + $0x200] sm:$0xff]  ;;  %v208_v51 = vld [vmem:[%s1461_s24 + $0x208] sm:$0xff] }
  0x28   : > { %v158_v46 = vld [vmem:[%s1461_s24 + $0x78] sm:$0xff]  ;;  %v191_v49 = vld [vmem:[%s1461_s24 + $0x180] sm:$0xff]  ;;  %v192_v52 = vld [vmem:[%s1461_s24 + $0x188] sm:$0xff] }
  0x29   : > { %465 = vxpose.xlu1.b32.cont [3/16] (narrow) %v161_v6, 64  ;;  %v190_v47 = vld [vmem:[%s1461_s24 + $0x178] sm:$0xff]  ;;  %v223_v50 = vld [vmem:[%s1461_s24 + $0x280] sm:$0xff]  ;;  %v224_v53 = vld [vmem:[%s1461_s24 + $0x288] sm:$0xff] }
  0x2a   : > { %433 = vxpose.xlu0.b32.cont [3/16] (narrow) %v145_v7, 64  ;;  %v209_v54 = vld [vmem:[%s1461_s24 + $0x210] sm:$0xff]  ;;  %v210_v57 = vld [vmem:[%s1461_s24 + $0x218] sm:$0xff]  ;;  %v211_v60 = vld [vmem:[%s1461_s24 + $0x220] sm:$0xff] }
  0x2b   : > { %497 = vxpose.xlu2.b32.cont [3/16] (narrow) %v177_v8, 64  ;;  %v193_v55 = vld [vmem:[%s1461_s24 + $0x190] sm:$0xff]  ;;  %v194_v58 = vld [vmem:[%s1461_s24 + $0x198] sm:$0xff]  ;;  %v195_v61 = vld [vmem:[%s1461_s24 + $0x1a0] sm:$0xff] }
  0x2c   : > { %v225_v56 = vld [vmem:[%s1461_s24 + $0x290] sm:$0xff]  ;;  %v226_v59 = vld [vmem:[%s1461_s24 + $0x298] sm:$0xff]  ;;  %v227_v62 = vld [vmem:[%s1461_s24 + $0x2a0] sm:$0xff] }
  0x2d   : > { %v212_v63 = vld [vmem:[%s1461_s24 + $0x228] sm:$0xff]  ;;  %v213_v2 = vld [vmem:[%s1461_s24 + $0x230] sm:$0xff]  ;;  %v214_v5 = vld [vmem:[%s1461_s24 + $0x238] sm:$0xff] }
  0x2e   : > { %v196_v0 = vld [vmem:[%s1461_s24 + $0x1a8] sm:$0xff]  ;;  %v197_v3 = vld [vmem:[%s1461_s24 + $0x1b0] sm:$0xff]  ;;  %v198_v6 = vld [vmem:[%s1461_s24 + $0x1b8] sm:$0xff] }
  0x2f   : > { %v228_v1 = vld [vmem:[%s1461_s24 + $0x2a8] sm:$0xff]  ;;  %v229_v4 = vld [vmem:[%s1461_s24 + $0x2b0] sm:$0xff]  ;;  %v230_v7 = vld [vmem:[%s1461_s24 + $0x2b8] sm:$0xff] }
  0x30   : > { %v215_v8 = vld [vmem:[%s1461_s24 + $0x240] sm:$0xff] }
  0x31   : > { %466 = vxpose.xlu1.b32.cont [4/16] (narrow) %v162_v9, 64  ;;  %v199_v9 = vld [vmem:[%s1461_s24 + $0x1c0] sm:$0xff] }
  0x32   : > { %434 = vxpose.xlu0.b32.cont [4/16] (narrow) %v146_v10, 64  ;;  %v231_v10 = vld [vmem:[%s1461_s24 + $0x2c0] sm:$0xff] }
  0x33   : > { %498 = vxpose.xlu2.b32.cont [4/16] (narrow) %v178_v11, 64  ;;  %v216_v11 = vld [vmem:[%s1461_s24 + $0x248] sm:$0xff] }
  0x39   : > { %467 = vxpose.xlu1.b32.cont [5/16] (narrow) %v163_v12, 64  ;;  %v200_v12 = vld [vmem:[%s1461_s24 + $0x1c8] sm:$0xff] }
  0x3a   : > { %435 = vxpose.xlu0.b32.cont [5/16] (narrow) %v147_v13, 64  ;;  %v232_v13 = vld [vmem:[%s1461_s24 + $0x2c8] sm:$0xff] }
  0x3b   : > { %499 = vxpose.xlu2.b32.cont [5/16] (narrow) %v179_v14, 64  ;;  %v217_v14 = vld [vmem:[%s1461_s24 + $0x250] sm:$0xff] }
  0x41   : > { %468 = vxpose.xlu1.b32.cont [6/16] (narrow) %v164_v15, 64  ;;  %v201_v15 = vld [vmem:[%s1461_s24 + $0x1d0] sm:$0xff] }
  0x42   : > { %436 = vxpose.xlu0.b32.cont [6/16] (narrow) %v148_v16, 64  ;;  %v233_v16 = vld [vmem:[%s1461_s24 + $0x2d0] sm:$0xff] }
  0x43   : > { %500 = vxpose.xlu2.b32.cont [6/16] (narrow) %v180_v17, 64  ;;  %v218_v17 = vld [vmem:[%s1461_s24 + $0x258] sm:$0xff] }
  0x49   : > { %469 = vxpose.xlu1.b32.cont [7/16] (narrow) %v165_v18, 64  ;;  %v202_v18 = vld [vmem:[%s1461_s24 + $0x1d8] sm:$0xff] }
  0x4a   : > { %437 = vxpose.xlu0.b32.cont [7/16] (narrow) %v149_v19, 64  ;;  %v234_v19 = vld [vmem:[%s1461_s24 + $0x2d8] sm:$0xff] }
  0x4b   : > { %501 = vxpose.xlu2.b32.cont [7/16] (narrow) %v181_v20, 64  ;;  %v219_v20 = vld [vmem:[%s1461_s24 + $0x260] sm:$0xff] }
  0x51   : > { %470 = vxpose.xlu1.b32.cont [8/16] (narrow) %v166_v21, 64  ;;  %v203_v21 = vld [vmem:[%s1461_s24 + $0x1e0] sm:$0xff] }
  0x52   : > { %438 = vxpose.xlu0.b32.cont [8/16] (narrow) %v150_v22, 64  ;;  %v235_v22 = vld [vmem:[%s1461_s24 + $0x2e0] sm:$0xff] }
  0x53   : > { %502 = vxpose.xlu2.b32.cont [8/16] (narrow) %v182_v23, 64  ;;  %v220_v23 = vld [vmem:[%s1461_s24 + $0x268] sm:$0xff] }
  0x59   : > { %471 = vxpose.xlu1.b32.cont [9/16] (narrow) %v167_v24, 64  ;;  %v204_v24 = vld [vmem:[%s1461_s24 + $0x1e8] sm:$0xff] }
  0x5a   : > { %439 = vxpose.xlu0.b32.cont [9/16] (narrow) %v151_v25, 64  ;;  %v236_v25 = vld [vmem:[%s1461_s24 + $0x2e8] sm:$0xff] }
  0x5b   : > { %503 = vxpose.xlu2.b32.cont [9/16] (narrow) %v183_v26, 64  ;;  %v221_v26 = vld [vmem:[%s1461_s24 + $0x270] sm:$0xff] }
  0x61   : > { %472 = vxpose.xlu1.b32.cont [10/16] (narrow) %v168_v27, 64  ;;  %v205_v27 = vld [vmem:[%s1461_s24 + $0x1f0] sm:$0xff] }
  0x62   : > { %440 = vxpose.xlu0.b32.cont [10/16] (narrow) %v152_v28, 64  ;;  %v237_v28 = vld [vmem:[%s1461_s24 + $0x2f0] sm:$0xff] }
  0x63   : > { %504 = vxpose.xlu2.b32.cont [10/16] (narrow) %v184_v29, 64  ;;  %v222_v29 = vld [vmem:[%s1461_s24 + $0x278] sm:$0xff] }
  0x69   : > { %473 = vxpose.xlu1.b32.cont [11/16] (narrow) %v169_v30, 64  ;;  %v206_v30 = vld [vmem:[%s1461_s24 + $0x1f8] sm:$0xff] }
  0x6a   : > { %441 = vxpose.xlu0.b32.cont [11/16] (narrow) %v153_v31, 64  ;;  %v238_v31 = vld [vmem:[%s1461_s24 + $0x2f8] sm:$0xff] }
  0x6b   : > { %505 = vxpose.xlu2.b32.cont [11/16] (narrow) %v185_v32, 64  ;;  %v255_v32 = vld [vmem:[%s1461_s24 + $0x380] sm:$0xff] }
  0x71   : > { %474 = vxpose.xlu1.b32.cont [12/16] (narrow) %v170_v33, 64  ;;  %v239_v33 = vld [vmem:[%s1461_s24 + $0x300] sm:$0xff] }
  0x72   : > { %442 = vxpose.xlu0.b32.cont [12/16] (narrow) %v154_v34, 64  ;;  %v271_v34 = vld [vmem:[%s1461_s24 + $0x400] sm:$0xff] }
  0x73   : > { %506 = vxpose.xlu2.b32.cont [12/16] (narrow) %v186_v35, 64  ;;  %v256_v35 = vld [vmem:[%s1461_s24 + $0x388] sm:$0xff] }
  0x79   : > { %475 = vxpose.xlu1.b32.cont [13/16] (narrow) %v171_v36, 64  ;;  %v240_v36 = vld [vmem:[%s1461_s24 + $0x308] sm:$0xff] }
  0x7a   : > { %443 = vxpose.xlu0.b32.cont [13/16] (narrow) %v155_v37, 64  ;;  %v272_v37 = vld [vmem:[%s1461_s24 + $0x408] sm:$0xff] }
  0x7b   : > { %507 = vxpose.xlu2.b32.cont [13/16] (narrow) %v187_v38, 64  ;;  %v257_v38 = vld [vmem:[%s1461_s24 + $0x390] sm:$0xff] }
  0x81   : > { %476 = vxpose.xlu1.b32.cont [14/16] (narrow) %v172_v39, 64  ;;  %v241_v39 = vld [vmem:[%s1461_s24 + $0x310] sm:$0xff] }
  0x82   : > { %444 = vxpose.xlu0.b32.cont [14/16] (narrow) %v156_v40, 64  ;;  %v273_v40 = vld [vmem:[%s1461_s24 + $0x410] sm:$0xff] }
  0x83   : > { %508 = vxpose.xlu2.b32.cont [14/16] (narrow) %v188_v41, 64  ;;  %v258_v41 = vld [vmem:[%s1461_s24 + $0x398] sm:$0xff] }
  0x89   : > { %477 = vxpose.xlu1.b32.cont [15/16] (narrow) %v173_v42, 64  ;;  %v242_v42 = vld [vmem:[%s1461_s24 + $0x318] sm:$0xff] }
  0x8a   : > { %445 = vxpose.xlu0.b32.cont [15/16] (narrow) %v157_v43, 64  ;;  %v274_v43 = vld [vmem:[%s1461_s24 + $0x418] sm:$0xff] }
  0x8b   : > { %509 = vxpose.xlu2.b32.cont [15/16] (narrow) %v189_v44, 64  ;;  %v259_v44 = vld [vmem:[%s1461_s24 + $0x3a0] sm:$0xff] }
  0x91   : > { %478 = vxpose.xlu1.b32.end [16/16] (narrow) %v174_v45, 64  ;;  %v243_v45 = vld [vmem:[%s1461_s24 + $0x320] sm:$0xff] }
  0x92   : > { %446 = vxpose.xlu0.b32.end [16/16] (narrow) %v158_v46, 64  ;;  %v275_v46 = vld [vmem:[%s1461_s24 + $0x420] sm:$0xff] }
  0x93   : > { %510 = vxpose.xlu2.b32.end [16/16] (narrow) %v190_v47, 64  ;;  %v260_v47 = vld [vmem:[%s1461_s24 + $0x3a8] sm:$0xff] }
  0x99   : > { %559 = vxpose.xlu1.b32.start [1/16] (narrow) %v207_v48, 64  ;;  %v244_v48 = vld [vmem:[%s1461_s24 + $0x328] sm:$0xff] }
  0x9a   : > { %527 = vxpose.xlu0.b32.start [1/16] (narrow) %v191_v49, 64  ;;  %v276_v49 = vld [vmem:[%s1461_s24 + $0x428] sm:$0xff] }
  0x9b   : > { %591 = vxpose.xlu2.b32.start [1/16] (narrow) %v223_v50, 64  ;;  %v261_v50 = vld [vmem:[%s1461_s24 + $0x3b0] sm:$0xff] }
  0xa1   : > { %560 = vxpose.xlu1.b32.cont [2/16] (narrow) %v208_v51, 64  ;;  %v245_v51 = vld [vmem:[%s1461_s24 + $0x330] sm:$0xff] }
  0xa2   : > { %528 = vxpose.xlu0.b32.cont [2/16] (narrow) %v192_v52, 64  ;;  %v277_v52 = vld [vmem:[%s1461_s24 + $0x430] sm:$0xff] }
  0xa3   : > { %592 = vxpose.xlu2.b32.cont [2/16] (narrow) %v224_v53, 64  ;;  %v262_v53 = vld [vmem:[%s1461_s24 + $0x3b8] sm:$0xff] }
  0xa9   : > { %561 = vxpose.xlu1.b32.cont [3/16] (narrow) %v209_v54, 64  ;;  %v246_v54 = vld [vmem:[%s1461_s24 + $0x338] sm:$0xff] }
  0xaa   : > { %529 = vxpose.xlu0.b32.cont [3/16] (narrow) %v193_v55, 64  ;;  %v278_v55 = vld [vmem:[%s1461_s24 + $0x438] sm:$0xff] }
  0xab   : > { %593 = vxpose.xlu2.b32.cont [3/16] (narrow) %v225_v56, 64  ;;  %v263_v56 = vld [vmem:[%s1461_s24 + $0x3c0] sm:$0xff] }
  0xb1   : > { %562 = vxpose.xlu1.b32.cont [4/16] (narrow) %v210_v57, 64  ;;  %v247_v57 = vld [vmem:[%s1461_s24 + $0x340] sm:$0xff] }
  0xb2   : > { %530 = vxpose.xlu0.b32.cont [4/16] (narrow) %v194_v58, 64  ;;  %v279_v58 = vld [vmem:[%s1461_s24 + $0x440] sm:$0xff] }
  0xb3   : > { %594 = vxpose.xlu2.b32.cont [4/16] (narrow) %v226_v59, 64  ;;  %v264_v59 = vld [vmem:[%s1461_s24 + $0x3c8] sm:$0xff] }
  0xb9   : > { %563 = vxpose.xlu1.b32.cont [5/16] (narrow) %v211_v60, 64  ;;  %v248_v60 = vld [vmem:[%s1461_s24 + $0x348] sm:$0xff] }
  0xba   : > { %531 = vxpose.xlu0.b32.cont [5/16] (narrow) %v195_v61, 64  ;;  %v280_v61 = vld [vmem:[%s1461_s24 + $0x448] sm:$0xff] }
  0xbb   : > { %595 = vxpose.xlu2.b32.cont [5/16] (narrow) %v227_v62, 64  ;;  %v265_v62 = vld [vmem:[%s1461_s24 + $0x3d0] sm:$0xff] }
  0xc1   : > { %564 = vxpose.xlu1.b32.cont [6/16] (narrow) %v212_v63, 64  ;;  %v249_v63 = vld [vmem:[%s1461_s24 + $0x350] sm:$0xff] }
  0xc2   : > { %532 = vxpose.xlu0.b32.cont [6/16] (narrow) %v196_v0, 64  ;;  %v281_v0 = vld [vmem:[%s1461_s24 + $0x450] sm:$0xff] }
  0xc3   : > { %596 = vxpose.xlu2.b32.cont [6/16] (narrow) %v228_v1, 64  ;;  %v266_v1 = vld [vmem:[%s1461_s24 + $0x3d8] sm:$0xff] }
  0xc9   : > { %565 = vxpose.xlu1.b32.cont [7/16] (narrow) %v213_v2, 64  ;;  %v250_v2 = vld [vmem:[%s1461_s24 + $0x358] sm:$0xff] }
  0xca   : > { %533 = vxpose.xlu0.b32.cont [7/16] (narrow) %v197_v3, 64  ;;  %v282_v3 = vld [vmem:[%s1461_s24 + $0x458] sm:$0xff] }
  0xcb   : > { %597 = vxpose.xlu2.b32.cont [7/16] (narrow) %v229_v4, 64  ;;  %v267_v4 = vld [vmem:[%s1461_s24 + $0x3e0] sm:$0xff] }
  0xd1   : > { %566 = vxpose.xlu1.b32.cont [8/16] (narrow) %v214_v5, 64  ;;  %v251_v5 = vld [vmem:[%s1461_s24 + $0x360] sm:$0xff] }
  0xd2   : > { %534 = vxpose.xlu0.b32.cont [8/16] (narrow) %v198_v6, 64  ;;  %v283_v6 = vld [vmem:[%s1461_s24 + $0x460] sm:$0xff] }
  0xd3   : > { %598 = vxpose.xlu2.b32.cont [8/16] (narrow) %v230_v7, 64  ;;  %v268_v7 = vld [vmem:[%s1461_s24 + $0x3e8] sm:$0xff] }
  0xd9   : > { %567 = vxpose.xlu1.b32.cont [9/16] (narrow) %v215_v8, 64  ;;  %v252_v8 = vld [vmem:[%s1461_s24 + $0x368] sm:$0xff] }
  0xda   : > { %535 = vxpose.xlu0.b32.cont [9/16] (narrow) %v199_v9, 64  ;;  %v284_v9 = vld [vmem:[%s1461_s24 + $0x468] sm:$0xff] }
  0xdb   : > { %599 = vxpose.xlu2.b32.cont [9/16] (narrow) %v231_v10, 64  ;;  %v269_v10 = vld [vmem:[%s1461_s24 + $0x3f0] sm:$0xff] }
  0xe1   : > { %568 = vxpose.xlu1.b32.cont [10/16] (narrow) %v216_v11, 64  ;;  %v253_v11 = vld [vmem:[%s1461_s24 + $0x370] sm:$0xff] }
  0xe2   : > { %536 = vxpose.xlu0.b32.cont [10/16] (narrow) %v200_v12, 64  ;;  %v285_v12 = vld [vmem:[%s1461_s24 + $0x470] sm:$0xff] }
  0xe3   : > { %600 = vxpose.xlu2.b32.cont [10/16] (narrow) %v232_v13, 64  ;;  %v270_v13 = vld [vmem:[%s1461_s24 + $0x3f8] sm:$0xff] }
  0xe9   : > { %569 = vxpose.xlu1.b32.cont [11/16] (narrow) %v217_v14, 64  ;;  %v254_v14 = vld [vmem:[%s1461_s24 + $0x378] sm:$0xff] }
  0xea   : > { %537 = vxpose.xlu0.b32.cont [11/16] (narrow) %v201_v15, 64  ;;  %v286_v15 = vld [vmem:[%s1461_s24 + $0x478] sm:$0xff] }
  0xeb   : > { %601 = vxpose.xlu2.b32.cont [11/16] (narrow) %v233_v16, 64  ;;  %v303_v16 = vld [vmem:[%s1461_s24 + $0x500] sm:$0xff] }
  0xf1   : > { %570 = vxpose.xlu1.b32.cont [12/16] (narrow) %v218_v17, 64  ;;  %v287_v17 = vld [vmem:[%s1461_s24 + $0x480] sm:$0xff] }
  0xf2   : > { %538 = vxpose.xlu0.b32.cont [12/16] (narrow) %v202_v18, 64  ;;  %v319_v18 = vld [vmem:[%s1461_s24 + $0x580] sm:$0xff] }
  0xf3   : > { %602 = vxpose.xlu2.b32.cont [12/16] (narrow) %v234_v19, 64  ;;  %v304_v19 = vld [vmem:[%s1461_s24 + $0x508] sm:$0xff] }
  0xf9   : > { %571 = vxpose.xlu1.b32.cont [13/16] (narrow) %v219_v20, 64  ;;  %v288_v20 = vld [vmem:[%s1461_s24 + $0x488] sm:$0xff] }
  0xfa   : > { %539 = vxpose.xlu0.b32.cont [13/16] (narrow) %v203_v21, 64  ;;  %v320_v21 = vld [vmem:[%s1461_s24 + $0x588] sm:$0xff] }
  0xfb   : > { %603 = vxpose.xlu2.b32.cont [13/16] (narrow) %v235_v22, 64  ;;  %v305_v22 = vld [vmem:[%s1461_s24 + $0x510] sm:$0xff] }
 0x101   : > { %572 = vxpose.xlu1.b32.cont [14/16] (narrow) %v220_v23, 64  ;;  %v289_v23 = vld [vmem:[%s1461_s24 + $0x490] sm:$0xff] }
 0x102   : > { %540 = vxpose.xlu0.b32.cont [14/16] (narrow) %v204_v24, 64  ;;  %v321_v24 = vld [vmem:[%s1461_s24 + $0x590] sm:$0xff] }
 0x103   : > { %604 = vxpose.xlu2.b32.cont [14/16] (narrow) %v236_v25, 64  ;;  %v306_v25 = vld [vmem:[%s1461_s24 + $0x518] sm:$0xff] }
 0x109   : > { %573 = vxpose.xlu1.b32.cont [15/16] (narrow) %v221_v26, 64  ;;  %v290_v26 = vld [vmem:[%s1461_s24 + $0x498] sm:$0xff] }
 0x10a   : > { %541 = vxpose.xlu0.b32.cont [15/16] (narrow) %v205_v27, 64  ;;  %v322_v27 = vld [vmem:[%s1461_s24 + $0x598] sm:$0xff] }
 0x10b   : > { %605 = vxpose.xlu2.b32.cont [15/16] (narrow) %v237_v28, 64  ;;  %v307_v28 = vld [vmem:[%s1461_s24 + $0x520] sm:$0xff] }
 0x111   : > { %574 = vxpose.xlu1.b32.end [16/16] (narrow) %v222_v29, 64  ;;  %v291_v29 = vld [vmem:[%s1461_s24 + $0x4a0] sm:$0xff] }
 0x112   : > { %542 = vxpose.xlu0.b32.end [16/16] (narrow) %v206_v30, 64  ;;  %v323_v30 = vld [vmem:[%s1461_s24 + $0x5a0] sm:$0xff] }
 0x113   : > { %606 = vxpose.xlu2.b32.end [16/16] (narrow) %v238_v31, 64  ;;  %v308_v31 = vld [vmem:[%s1461_s24 + $0x528] sm:$0xff] }
 0x119   : > { %655 = vxpose.xlu1.b32.start [1/16] (narrow) %v255_v32, 64  ;;  %v292_v32 = vld [vmem:[%s1461_s24 + $0x4a8] sm:$0xff] }
 0x11a   : > { %623 = vxpose.xlu0.b32.start [1/16] (narrow) %v239_v33, 64  ;;  %v324_v33 = vld [vmem:[%s1461_s24 + $0x5a8] sm:$0xff] }
 0x11b   : > { %687 = vxpose.xlu2.b32.start [1/16] (narrow) %v271_v34, 64  ;;  %v309_v34 = vld [vmem:[%s1461_s24 + $0x530] sm:$0xff] }
 0x121   : > { %656 = vxpose.xlu1.b32.cont [2/16] (narrow) %v256_v35, 64  ;;  %v293_v35 = vld [vmem:[%s1461_s24 + $0x4b0] sm:$0xff] }
 0x122   : > { %624 = vxpose.xlu0.b32.cont [2/16] (narrow) %v240_v36, 64  ;;  %v325_v36 = vld [vmem:[%s1461_s24 + $0x5b0] sm:$0xff] }
 0x123   : > { %688 = vxpose.xlu2.b32.cont [2/16] (narrow) %v272_v37, 64  ;;  %v310_v37 = vld [vmem:[%s1461_s24 + $0x538] sm:$0xff] }
 0x129   : > { %657 = vxpose.xlu1.b32.cont [3/16] (narrow) %v257_v38, 64  ;;  %v294_v38 = vld [vmem:[%s1461_s24 + $0x4b8] sm:$0xff] }
 0x12a   : > { %625 = vxpose.xlu0.b32.cont [3/16] (narrow) %v241_v39, 64  ;;  %v326_v39 = vld [vmem:[%s1461_s24 + $0x5b8] sm:$0xff] }
 0x12b   : > { %689 = vxpose.xlu2.b32.cont [3/16] (narrow) %v273_v40, 64  ;;  %v311_v40 = vld [vmem:[%s1461_s24 + $0x540] sm:$0xff] }
 0x131   : > { %658 = vxpose.xlu1.b32.cont [4/16] (narrow) %v258_v41, 64  ;;  %v295_v41 = vld [vmem:[%s1461_s24 + $0x4c0] sm:$0xff] }
 0x132   : > { %626 = vxpose.xlu0.b32.cont [4/16] (narrow) %v242_v42, 64  ;;  %v327_v42 = vld [vmem:[%s1461_s24 + $0x5c0] sm:$0xff] }
 0x133   : > { %690 = vxpose.xlu2.b32.cont [4/16] (narrow) %v274_v43, 64  ;;  %v511_v43 = vpop.trf.xlu2 }
 0x134   : > { %1009 = vst [vmem:[%s1637_s27 + $0x10] sm:$0xff] %v511_v43  ;;  %v338_v43 = vld [vmem:[%s1461_s24 + $0x618] sm:$0xff] }
 0x139   : > { %659 = vxpose.xlu1.b32.cont [5/16] (narrow) %v259_v44, 64  ;;  %v479_v44 = vpop.trf.xlu1 }
 0x13a   : > { %627 = vxpose.xlu0.b32.cont [5/16] (narrow) %v243_v45, 64  ;;  %v447_v45 = vpop.trf.xlu0  ;;  %1008 = vst [vmem:[%s1637_s27 + $0x8] sm:$0xff] %v479_v44  ;;  %v370_v44 = vld [vmem:[%s1461_s24 + $0x718] sm:$0xff] }
 0x13b   : > { %691 = vxpose.xlu2.b32.cont [5/16] (narrow) %v275_v46, 64  ;;  %1007 = vst [vmem:[%s1637_s27] sm:$0xff] %v447_v45  ;;  %v312_v46 = vld [vmem:[%s1461_s24 + $0x548] sm:$0xff] }
 0x141   : > { %660 = vxpose.xlu1.b32.cont [6/16] (narrow) %v260_v47, 64  ;;  %v296_v47 = vld [vmem:[%s1461_s24 + $0x4c8] sm:$0xff] }
 0x142   : > { %628 = vxpose.xlu0.b32.cont [6/16] (narrow) %v244_v48, 64  ;;  %v328_v48 = vld [vmem:[%s1461_s24 + $0x5c8] sm:$0xff] }
 0x143   : > { %692 = vxpose.xlu2.b32.cont [6/16] (narrow) %v276_v49, 64  ;;  %v512_v49 = vpop.trf.xlu2 }
 0x144   : > { %1012 = vst [vmem:[%s1637_s27 + $0x28] sm:$0xff] %v512_v49  ;;  %v339_v49 = vld [vmem:[%s1461_s24 + $0x620] sm:$0xff] }
 0x149   : > { %661 = vxpose.xlu1.b32.cont [7/16] (narrow) %v261_v50, 64  ;;  %v480_v50 = vpop.trf.xlu1 }
 0x14a   : > { %629 = vxpose.xlu0.b32.cont [7/16] (narrow) %v245_v51, 64  ;;  %v448_v51 = vpop.trf.xlu0  ;;  %1011 = vst [vmem:[%s1637_s27 + $0x20] sm:$0xff] %v480_v50  ;;  %v371_v50 = vld [vmem:[%s1461_s24 + $0x720] sm:$0xff] }
 0x14b   : > { %693 = vxpose.xlu2.b32.cont [7/16] (narrow) %v277_v52, 64  ;;  %1010 = vst [vmem:[%s1637_s27 + $0x18] sm:$0xff] %v448_v51  ;;  %v313_v52 = vld [vmem:[%s1461_s24 + $0x550] sm:$0xff] }
 0x151   : > { %662 = vxpose.xlu1.b32.cont [8/16] (narrow) %v262_v53, 64  ;;  %v297_v53 = vld [vmem:[%s1461_s24 + $0x4d0] sm:$0xff] }
 0x152   : > { %630 = vxpose.xlu0.b32.cont [8/16] (narrow) %v246_v54, 64  ;;  %v329_v54 = vld [vmem:[%s1461_s24 + $0x5d0] sm:$0xff] }
 0x153   : > { %694 = vxpose.xlu2.b32.cont [8/16] (narrow) %v278_v55, 64  ;;  %v513_v55 = vpop.trf.xlu2 }
 0x154   : > { %1015 = vst [vmem:[%s1637_s27 + $0x40] sm:$0xff] %v513_v55  ;;  %v340_v55 = vld [vmem:[%s1461_s24 + $0x628] sm:$0xff] }
 0x159   : > { %663 = vxpose.xlu1.b32.cont [9/16] (narrow) %v263_v56, 64  ;;  %v481_v56 = vpop.trf.xlu1 }
 0x15a   : > { %631 = vxpose.xlu0.b32.cont [9/16] (narrow) %v247_v57, 64  ;;  %v449_v57 = vpop.trf.xlu0  ;;  %1014 = vst [vmem:[%s1637_s27 + $0x38] sm:$0xff] %v481_v56  ;;  %v372_v56 = vld [vmem:[%s1461_s24 + $0x728] sm:$0xff] }
 0x15b   : > { %695 = vxpose.xlu2.b32.cont [9/16] (narrow) %v279_v58, 64  ;;  %1013 = vst [vmem:[%s1637_s27 + $0x30] sm:$0xff] %v449_v57  ;;  %v314_v58 = vld [vmem:[%s1461_s24 + $0x558] sm:$0xff] }
 0x161   : > { %664 = vxpose.xlu1.b32.cont [10/16] (narrow) %v264_v59, 64  ;;  %v298_v59 = vld [vmem:[%s1461_s24 + $0x4d8] sm:$0xff] }
 0x162   : > { %632 = vxpose.xlu0.b32.cont [10/16] (narrow) %v248_v60, 64  ;;  %v330_v60 = vld [vmem:[%s1461_s24 + $0x5d8] sm:$0xff] }
 0x163   : > { %696 = vxpose.xlu2.b32.cont [10/16] (narrow) %v280_v61, 64  ;;  %v514_v61 = vpop.trf.xlu2 }
 0x164   : > { %1018 = vst [vmem:[%s1637_s27 + $0x58] sm:$0xff] %v514_v61  ;;  %v341_v61 = vld [vmem:[%s1461_s24 + $0x630] sm:$0xff] }
 0x169   : > { %665 = vxpose.xlu1.b32.cont [11/16] (narrow) %v265_v62, 64  ;;  %v482_v62 = vpop.trf.xlu1 }
 0x16a   : > { %633 = vxpose.xlu0.b32.cont [11/16] (narrow) %v249_v63, 64  ;;  %v450_v63 = vpop.trf.xlu0  ;;  %1017 = vst [vmem:[%s1637_s27 + $0x50] sm:$0xff] %v482_v62  ;;  %v373_v62 = vld [vmem:[%s1461_s24 + $0x730] sm:$0xff] }
 0x16b   : > { %697 = vxpose.xlu2.b32.cont [11/16] (narrow) %v281_v0, 64  ;;  %1016 = vst [vmem:[%s1637_s27 + $0x48] sm:$0xff] %v450_v63  ;;  %v315_v0 = vld [vmem:[%s1461_s24 + $0x560] sm:$0xff] }
 0x171   : > { %666 = vxpose.xlu1.b32.cont [12/16] (narrow) %v266_v1, 64  ;;  %v299_v1 = vld [vmem:[%s1461_s24 + $0x4e0] sm:$0xff] }
 0x172   : > { %634 = vxpose.xlu0.b32.cont [12/16] (narrow) %v250_v2, 64  ;;  %v331_v2 = vld [vmem:[%s1461_s24 + $0x5e0] sm:$0xff] }
 0x173   : > { %698 = vxpose.xlu2.b32.cont [12/16] (narrow) %v282_v3, 64  ;;  %v515_v3 = vpop.trf.xlu2 }
 0x174   : > { %1021 = vst [vmem:[%s1637_s27 + $0x70] sm:$0xff] %v515_v3  ;;  %v342_v3 = vld [vmem:[%s1461_s24 + $0x638] sm:$0xff] }
 0x179   : > { %667 = vxpose.xlu1.b32.cont [13/16] (narrow) %v267_v4, 64  ;;  %v483_v4 = vpop.trf.xlu1 }
 0x17a   : > { %635 = vxpose.xlu0.b32.cont [13/16] (narrow) %v251_v5, 64  ;;  %v451_v5 = vpop.trf.xlu0  ;;  %1020 = vst [vmem:[%s1637_s27 + $0x68] sm:$0xff] %v483_v4  ;;  %v374_v4 = vld [vmem:[%s1461_s24 + $0x738] sm:$0xff] }
 0x17b   : > { %699 = vxpose.xlu2.b32.cont [13/16] (narrow) %v283_v6, 64  ;;  %1019 = vst [vmem:[%s1637_s27 + $0x60] sm:$0xff] %v451_v5  ;;  %v316_v6 = vld [vmem:[%s1461_s24 + $0x568] sm:$0xff] }
 0x181   : > { %668 = vxpose.xlu1.b32.cont [14/16] (narrow) %v268_v7, 64  ;;  %v300_v7 = vld [vmem:[%s1461_s24 + $0x4e8] sm:$0xff] }
 0x182   : > { %636 = vxpose.xlu0.b32.cont [14/16] (narrow) %v252_v8, 64  ;;  %v332_v8 = vld [vmem:[%s1461_s24 + $0x5e8] sm:$0xff] }
 0x183   : > { %700 = vxpose.xlu2.b32.cont [14/16] (narrow) %v284_v9, 64  ;;  %v516_v9 = vpop.trf.xlu2 }
 0x184   : > { %1024 = vst [vmem:[%s1637_s27 + $0x88] sm:$0xff] %v516_v9  ;;  %v343_v9 = vld [vmem:[%s1461_s24 + $0x640] sm:$0xff] }
 0x189   : > { %669 = vxpose.xlu1.b32.cont [15/16] (narrow) %v269_v10, 64  ;;  %v484_v10 = vpop.trf.xlu1 }
 0x18a   : > { %637 = vxpose.xlu0.b32.cont [15/16] (narrow) %v253_v11, 64  ;;  %v452_v11 = vpop.trf.xlu0  ;;  %1023 = vst [vmem:[%s1637_s27 + $0x80] sm:$0xff] %v484_v10  ;;  %v375_v10 = vld [vmem:[%s1461_s24 + $0x740] sm:$0xff] }
 0x18b   : > { %701 = vxpose.xlu2.b32.cont [15/16] (narrow) %v285_v12, 64  ;;  %1022 = vst [vmem:[%s1637_s27 + $0x78] sm:$0xff] %v452_v11  ;;  %v317_v12 = vld [vmem:[%s1461_s24 + $0x570] sm:$0xff] }
 0x191   : > { %670 = vxpose.xlu1.b32.end [16/16] (narrow) %v270_v13, 64  ;;  %v301_v13 = vld [vmem:[%s1461_s24 + $0x4f0] sm:$0xff] }
 0x192   : > { %638 = vxpose.xlu0.b32.end [16/16] (narrow) %v254_v14, 64  ;;  %v333_v14 = vld [vmem:[%s1461_s24 + $0x5f0] sm:$0xff] }
 0x193   : > { %702 = vxpose.xlu2.b32.end [16/16] (narrow) %v286_v15, 64  ;;  %v517_v15 = vpop.trf.xlu2 }
 0x194   : > { %1027 = vst [vmem:[%s1637_s27 + $0xa0] sm:$0xff] %v517_v15  ;;  %v344_v15 = vld [vmem:[%s1461_s24 + $0x648] sm:$0xff] }
 0x199   : > { %751 = vxpose.xlu1.b32.start [1/16] (narrow) %v303_v16, 64  ;;  %v485_v16 = vpop.trf.xlu1 }
 0x19a   : > { %719 = vxpose.xlu0.b32.start [1/16] (narrow) %v287_v17, 64  ;;  %v453_v17 = vpop.trf.xlu0  ;;  %1026 = vst [vmem:[%s1637_s27 + $0x98] sm:$0xff] %v485_v16  ;;  %v376_v16 = vld [vmem:[%s1461_s24 + $0x748] sm:$0xff] }
 0x19b   : > { %783 = vxpose.xlu2.b32.start [1/16] (narrow) %v319_v18, 64  ;;  %1025 = vst [vmem:[%s1637_s27 + $0x90] sm:$0xff] %v453_v17  ;;  %v318_v18 = vld [vmem:[%s1461_s24 + $0x578] sm:$0xff] }
 0x1a1   : > { %752 = vxpose.xlu1.b32.cont [2/16] (narrow) %v304_v19, 64  ;;  %v302_v19 = vld [vmem:[%s1461_s24 + $0x4f8] sm:$0xff] }
 0x1a2   : > { %720 = vxpose.xlu0.b32.cont [2/16] (narrow) %v288_v20, 64  ;;  %v334_v20 = vld [vmem:[%s1461_s24 + $0x5f8] sm:$0xff] }
 0x1a3   : > { %784 = vxpose.xlu2.b32.cont [2/16] (narrow) %v320_v21, 64  ;;  %v518_v21 = vpop.trf.xlu2 }
 0x1a4   : > { %1030 = vst [vmem:[%s1637_s27 + $0xb8] sm:$0xff] %v518_v21  ;;  %v345_v21 = vld [vmem:[%s1461_s24 + $0x650] sm:$0xff] }
 0x1a9   : > { %753 = vxpose.xlu1.b32.cont [3/16] (narrow) %v305_v22, 64  ;;  %v486_v22 = vpop.trf.xlu1 }
 0x1aa   : > { %721 = vxpose.xlu0.b32.cont [3/16] (narrow) %v289_v23, 64  ;;  %v454_v23 = vpop.trf.xlu0  ;;  %1029 = vst [vmem:[%s1637_s27 + $0xb0] sm:$0xff] %v486_v22  ;;  %v377_v22 = vld [vmem:[%s1461_s24 + $0x750] sm:$0xff] }
 0x1ab   : > { %785 = vxpose.xlu2.b32.cont [3/16] (narrow) %v321_v24, 64  ;;  %1028 = vst [vmem:[%s1637_s27 + $0xa8] sm:$0xff] %v454_v23  ;;  %v351_v24 = vld [vmem:[%s1461_s24 + $0x680] sm:$0xff] }
 0x1b1   : > { %754 = vxpose.xlu1.b32.cont [4/16] (narrow) %v306_v25, 64  ;;  %v335_v25 = vld [vmem:[%s1461_s24 + $0x600] sm:$0xff] }
 0x1b2   : > { %722 = vxpose.xlu0.b32.cont [4/16] (narrow) %v290_v26, 64  ;;  %v367_v26 = vld [vmem:[%s1461_s24 + $0x700] sm:$0xff] }
 0x1b3   : > { %786 = vxpose.xlu2.b32.cont [4/16] (narrow) %v322_v27, 64  ;;  %v607_v27 = vpop.trf.xlu2 }
 0x1b4   : > { %1033 = vst [vmem:[%s1637_s27 + $0xd0] sm:$0xff] %v607_v27  ;;  %v346_v27 = vld [vmem:[%s1461_s24 + $0x658] sm:$0xff] }
 0x1b9   : > { %755 = vxpose.xlu1.b32.cont [5/16] (narrow) %v307_v28, 64  ;;  %v575_v28 = vpop.trf.xlu1 }
 0x1ba   : > { %723 = vxpose.xlu0.b32.cont [5/16] (narrow) %v291_v29, 64  ;;  %v543_v29 = vpop.trf.xlu0  ;;  %1032 = vst [vmem:[%s1637_s27 + $0xc8] sm:$0xff] %v575_v28  ;;  %v378_v28 = vld [vmem:[%s1461_s24 + $0x758] sm:$0xff] }
 0x1bb   : > { %787 = vxpose.xlu2.b32.cont [5/16] (narrow) %v323_v30, 64  ;;  %1031 = vst [vmem:[%s1637_s27 + $0xc0] sm:$0xff] %v543_v29  ;;  %v352_v30 = vld [vmem:[%s1461_s24 + $0x688] sm:$0xff] }
 0x1c1   : > { %756 = vxpose.xlu1.b32.cont [6/16] (narrow) %v308_v31, 64  ;;  %v336_v31 = vld [vmem:[%s1461_s24 + $0x608] sm:$0xff] }
 0x1c2   : > { %724 = vxpose.xlu0.b32.cont [6/16] (narrow) %v292_v32, 64  ;;  %v368_v32 = vld [vmem:[%s1461_s24 + $0x708] sm:$0xff] }
 0x1c3   : > { %788 = vxpose.xlu2.b32.cont [6/16] (narrow) %v324_v33, 64  ;;  %v608_v33 = vpop.trf.xlu2 }
 0x1c4   : > { %1036 = vst [vmem:[%s1637_s27 + $0xe8] sm:$0xff] %v608_v33  ;;  %v347_v33 = vld [vmem:[%s1461_s24 + $0x660] sm:$0xff] }
 0x1c9   : > { %757 = vxpose.xlu1.b32.cont [7/16] (narrow) %v309_v34, 64  ;;  %v576_v34 = vpop.trf.xlu1 }
 0x1ca   : > { %725 = vxpose.xlu0.b32.cont [7/16] (narrow) %v293_v35, 64  ;;  %v544_v35 = vpop.trf.xlu0  ;;  %1035 = vst [vmem:[%s1637_s27 + $0xe0] sm:$0xff] %v576_v34  ;;  %v379_v34 = vld [vmem:[%s1461_s24 + $0x760] sm:$0xff] }
 0x1cb   : > { %789 = vxpose.xlu2.b32.cont [7/16] (narrow) %v325_v36, 64  ;;  %1034 = vst [vmem:[%s1637_s27 + $0xd8] sm:$0xff] %v544_v35  ;;  %v353_v36 = vld [vmem:[%s1461_s24 + $0x690] sm:$0xff] }
 0x1d1   : > { %758 = vxpose.xlu1.b32.cont [8/16] (narrow) %v310_v37, 64  ;;  %v337_v37 = vld [vmem:[%s1461_s24 + $0x610] sm:$0xff] }
 0x1d2   : > { %726 = vxpose.xlu0.b32.cont [8/16] (narrow) %v294_v38, 64  ;;  %v369_v38 = vld [vmem:[%s1461_s24 + $0x710] sm:$0xff] }
 0x1d3   : > { %790 = vxpose.xlu2.b32.cont [8/16] (narrow) %v326_v39, 64  ;;  %v609_v39 = vpop.trf.xlu2 }
 0x1d4   : > { %1039 = vst [vmem:[%s1637_s27 + $0x100] sm:$0xff] %v609_v39  ;;  %v348_v39 = vld [vmem:[%s1461_s24 + $0x668] sm:$0xff] }
 0x1d9   : > { %759 = vxpose.xlu1.b32.cont [9/16] (narrow) %v311_v40, 64  ;;  %v577_v40 = vpop.trf.xlu1 }
 0x1da   : > { %727 = vxpose.xlu0.b32.cont [9/16] (narrow) %v295_v41, 64  ;;  %v545_v41 = vpop.trf.xlu0  ;;  %1038 = vst [vmem:[%s1637_s27 + $0xf8] sm:$0xff] %v577_v40  ;;  %v380_v40 = vld [vmem:[%s1461_s24 + $0x768] sm:$0xff] }
 0x1db   : > { %791 = vxpose.xlu2.b32.cont [9/16] (narrow) %v327_v42, 64  ;;  %1037 = vst [vmem:[%s1637_s27 + $0xf0] sm:$0xff] %v545_v41  ;;  %v354_v42 = vld [vmem:[%s1461_s24 + $0x698] sm:$0xff]  ;;  %v610_v45 = vpop.trf.xlu2 }
 0x1dc   : > { %1042 = vst [vmem:[%s1637_s27 + $0x118] sm:$0xff] %v610_v45  ;;  %v349_v45 = vld [vmem:[%s1461_s24 + $0x670] sm:$0xff] }
 0x1e1   : > { %760 = vxpose.xlu1.b32.cont [10/16] (narrow) %v312_v46, 64  ;;  %v578_v46 = vpop.trf.xlu1 }
 0x1e2   : > { %728 = vxpose.xlu0.b32.cont [10/16] (narrow) %v296_v47, 64  ;;  %v546_v47 = vpop.trf.xlu0  ;;  %1041 = vst [vmem:[%s1637_s27 + $0x110] sm:$0xff] %v578_v46  ;;  %v381_v46 = vld [vmem:[%s1461_s24 + $0x770] sm:$0xff] }
 0x1e3   : > { %792 = vxpose.xlu2.b32.cont [10/16] (narrow) %v328_v48, 64  ;;  %1040 = vst [vmem:[%s1637_s27 + $0x108] sm:$0xff] %v546_v47  ;;  %v355_v48 = vld [vmem:[%s1461_s24 + $0x6a0] sm:$0xff]  ;;  %v611_v51 = vpop.trf.xlu2 }
 0x1e4   : > { %1045 = vst [vmem:[%s1637_s27 + $0x130] sm:$0xff] %v611_v51  ;;  %v350_v51 = vld [vmem:[%s1461_s24 + $0x678] sm:$0xff] }
 0x1e9   : > { %761 = vxpose.xlu1.b32.cont [11/16] (narrow) %v313_v52, 64  ;;  %v579_v52 = vpop.trf.xlu1 }
 0x1ea   : > { %729 = vxpose.xlu0.b32.cont [11/16] (narrow) %v297_v53, 64  ;;  %v547_v53 = vpop.trf.xlu0  ;;  %1044 = vst [vmem:[%s1637_s27 + $0x128] sm:$0xff] %v579_v52  ;;  %v382_v52 = vld [vmem:[%s1461_s24 + $0x778] sm:$0xff] }
 0x1eb   : > { %793 = vxpose.xlu2.b32.cont [11/16] (narrow) %v329_v54, 64  ;;  %1043 = vst [vmem:[%s1637_s27 + $0x120] sm:$0xff] %v547_v53  ;;  %v356_v54 = vld [vmem:[%s1461_s24 + $0x6a8] sm:$0xff]  ;;  %v612_v57 = vpop.trf.xlu2 }
 0x1ec   : > { %1048 = vst [vmem:[%s1637_s27 + $0x148] sm:$0xff] %v612_v57  ;;  %v383_v57 = vld [vmem:[%s1461_s24 + $0x780] sm:$0xff] }
 0x1f1   : > { %762 = vxpose.xlu1.b32.cont [12/16] (narrow) %v314_v58, 64  ;;  %v580_v58 = vpop.trf.xlu1 }
 0x1f2   : > { %730 = vxpose.xlu0.b32.cont [12/16] (narrow) %v298_v59, 64  ;;  %v548_v59 = vpop.trf.xlu0  ;;  %1047 = vst [vmem:[%s1637_s27 + $0x140] sm:$0xff] %v580_v58  ;;  %v415_v58 = vld [vmem:[%s1461_s24 + $0x880] sm:$0xff] }
 0x1f3   : > { %794 = vxpose.xlu2.b32.cont [12/16] (narrow) %v330_v60, 64  ;;  %1046 = vst [vmem:[%s1637_s27 + $0x138] sm:$0xff] %v548_v59  ;;  %v357_v60 = vld [vmem:[%s1461_s24 + $0x6b0] sm:$0xff]  ;;  %v613_v63 = vpop.trf.xlu2 }
 0x1f4   : > { %1051 = vst [vmem:[%s1637_s27 + $0x160] sm:$0xff] %v613_v63  ;;  %v384_v63 = vld [vmem:[%s1461_s24 + $0x788] sm:$0xff] }
 0x1f9   : > { %763 = vxpose.xlu1.b32.cont [13/16] (narrow) %v315_v0, 64  ;;  %v581_v0 = vpop.trf.xlu1 }
 0x1fa   : > { %731 = vxpose.xlu0.b32.cont [13/16] (narrow) %v299_v1, 64  ;;  %v549_v1 = vpop.trf.xlu0  ;;  %1050 = vst [vmem:[%s1637_s27 + $0x158] sm:$0xff] %v581_v0  ;;  %v416_v0 = vld [vmem:[%s1461_s24 + $0x888] sm:$0xff] }
 0x1fb   : > { %795 = vxpose.xlu2.b32.cont [13/16] (narrow) %v331_v2, 64  ;;  %1049 = vst [vmem:[%s1637_s27 + $0x150] sm:$0xff] %v549_v1  ;;  %v358_v2 = vld [vmem:[%s1461_s24 + $0x6b8] sm:$0xff]  ;;  %v614_v5 = vpop.trf.xlu2 }
 0x1fc   : > { %1054 = vst [vmem:[%s1637_s27 + $0x178] sm:$0xff] %v614_v5  ;;  %v385_v5 = vld [vmem:[%s1461_s24 + $0x790] sm:$0xff] }
 0x201   : > { %764 = vxpose.xlu1.b32.cont [14/16] (narrow) %v316_v6, 64  ;;  %v582_v6 = vpop.trf.xlu1 }
 0x202   : > { %732 = vxpose.xlu0.b32.cont [14/16] (narrow) %v300_v7, 64  ;;  %v550_v7 = vpop.trf.xlu0  ;;  %1053 = vst [vmem:[%s1637_s27 + $0x170] sm:$0xff] %v582_v6  ;;  %v417_v6 = vld [vmem:[%s1461_s24 + $0x890] sm:$0xff] }
 0x203   : > { %796 = vxpose.xlu2.b32.cont [14/16] (narrow) %v332_v8, 64  ;;  %1052 = vst [vmem:[%s1637_s27 + $0x168] sm:$0xff] %v550_v7  ;;  %v359_v8 = vld [vmem:[%s1461_s24 + $0x6c0] sm:$0xff]  ;;  %v703_v11 = vpop.trf.xlu2 }
 0x204   : > { %1057 = vst [vmem:[%s1637_s27 + $0x190] sm:$0xff] %v703_v11  ;;  %v386_v11 = vld [vmem:[%s1461_s24 + $0x798] sm:$0xff] }
 0x209   : > { %765 = vxpose.xlu1.b32.cont [15/16] (narrow) %v317_v12, 64  ;;  %v671_v12 = vpop.trf.xlu1 }
 0x20a   : > { %733 = vxpose.xlu0.b32.cont [15/16] (narrow) %v301_v13, 64  ;;  %v639_v13 = vpop.trf.xlu0  ;;  %1056 = vst [vmem:[%s1637_s27 + $0x188] sm:$0xff] %v671_v12  ;;  %v418_v12 = vld [vmem:[%s1461_s24 + $0x898] sm:$0xff] }
 0x20b   : > { %797 = vxpose.xlu2.b32.cont [15/16] (narrow) %v333_v14, 64  ;;  %1055 = vst [vmem:[%s1637_s27 + $0x180] sm:$0xff] %v639_v13  ;;  %v360_v14 = vld [vmem:[%s1461_s24 + $0x6c8] sm:$0xff]  ;;  %v704_v17 = vpop.trf.xlu2 }
 0x20c   : > { %1060 = vst [vmem:[%s1637_s27 + $0x1a8] sm:$0xff] %v704_v17  ;;  %v387_v17 = vld [vmem:[%s1461_s24 + $0x7a0] sm:$0xff] }
 0x211   : > { %766 = vxpose.xlu1.b32.end [16/16] (narrow) %v318_v18, 64  ;;  %v672_v18 = vpop.trf.xlu1 }
 0x212   : > { %734 = vxpose.xlu0.b32.end [16/16] (narrow) %v302_v19, 64  ;;  %v640_v19 = vpop.trf.xlu0  ;;  %1059 = vst [vmem:[%s1637_s27 + $0x1a0] sm:$0xff] %v672_v18  ;;  %v419_v18 = vld [vmem:[%s1461_s24 + $0x8a0] sm:$0xff] }
 0x213   : > { %798 = vxpose.xlu2.b32.end [16/16] (narrow) %v334_v20, 64  ;;  %1058 = vst [vmem:[%s1637_s27 + $0x198] sm:$0xff] %v640_v19  ;;  %v361_v20 = vld [vmem:[%s1461_s24 + $0x6d0] sm:$0xff]  ;;  %v705_v23 = vpop.trf.xlu2 }
 0x214   : > { %1063 = vst [vmem:[%s1637_s27 + $0x1c0] sm:$0xff] %v705_v23  ;;  %v388_v23 = vld [vmem:[%s1461_s24 + $0x7a8] sm:$0xff] }
 0x219   : > { %847 = vxpose.xlu1.b32.start [1/16] (narrow) %v351_v24, 64  ;;  %v673_v24 = vpop.trf.xlu1 }
 0x21a   : > { %815 = vxpose.xlu0.b32.start [1/16] (narrow) %v335_v25, 64  ;;  %v641_v25 = vpop.trf.xlu0  ;;  %1062 = vst [vmem:[%s1637_s27 + $0x1b8] sm:$0xff] %v673_v24  ;;  %v420_v24 = vld [vmem:[%s1461_s24 + $0x8a8] sm:$0xff] }
 0x21b   : > { %879 = vxpose.xlu2.b32.start [1/16] (narrow) %v367_v26, 64  ;;  %1061 = vst [vmem:[%s1637_s27 + $0x1b0] sm:$0xff] %v641_v25  ;;  %v362_v26 = vld [vmem:[%s1461_s24 + $0x6d8] sm:$0xff]  ;;  %v706_v29 = vpop.trf.xlu2 }
 0x21c   : > { %1066 = vst [vmem:[%s1637_s27 + $0x1d8] sm:$0xff] %v706_v29  ;;  %v389_v29 = vld [vmem:[%s1461_s24 + $0x7b0] sm:$0xff] }
 0x221   : > { %848 = vxpose.xlu1.b32.cont [2/16] (narrow) %v352_v30, 64  ;;  %v674_v30 = vpop.trf.xlu1 }
 0x222   : > { %816 = vxpose.xlu0.b32.cont [2/16] (narrow) %v336_v31, 64  ;;  %v642_v31 = vpop.trf.xlu0  ;;  %1065 = vst [vmem:[%s1637_s27 + $0x1d0] sm:$0xff] %v674_v30  ;;  %v421_v30 = vld [vmem:[%s1461_s24 + $0x8b0] sm:$0xff] }
 0x223   : > { %880 = vxpose.xlu2.b32.cont [2/16] (narrow) %v368_v32, 64  ;;  %1064 = vst [vmem:[%s1637_s27 + $0x1c8] sm:$0xff] %v642_v31  ;;  %v363_v32 = vld [vmem:[%s1461_s24 + $0x6e0] sm:$0xff]  ;;  %v707_v35 = vpop.trf.xlu2 }
 0x224   : > { %1069 = vst [vmem:[%s1637_s27 + $0x1f0] sm:$0xff] %v707_v35  ;;  %v390_v35 = vld [vmem:[%s1461_s24 + $0x7b8] sm:$0xff] }
 0x229   : > { %849 = vxpose.xlu1.b32.cont [3/16] (narrow) %v353_v36, 64  ;;  %v675_v36 = vpop.trf.xlu1 }
 0x22a   : > { %817 = vxpose.xlu0.b32.cont [3/16] (narrow) %v337_v37, 64  ;;  %v643_v37 = vpop.trf.xlu0  ;;  %1068 = vst [vmem:[%s1637_s27 + $0x1e8] sm:$0xff] %v675_v36  ;;  %v422_v36 = vld [vmem:[%s1461_s24 + $0x8b8] sm:$0xff] }
 0x22b   : > { %881 = vxpose.xlu2.b32.cont [3/16] (narrow) %v369_v38, 64  ;;  %1067 = vst [vmem:[%s1637_s27 + $0x1e0] sm:$0xff] %v643_v37  ;;  %v364_v38 = vld [vmem:[%s1461_s24 + $0x6e8] sm:$0xff]  ;;  %v708_v41 = vpop.trf.xlu2 }
 0x22c   : > { %1072 = vst [vmem:[%s1637_s27 + $0x208] sm:$0xff] %v708_v41  ;;  %v391_v41 = vld [vmem:[%s1461_s24 + $0x7c0] sm:$0xff] }
 0x231   : > { %850 = vxpose.xlu1.b32.cont [4/16] (narrow) %v354_v42, 64  ;;  %v676_v42 = vpop.trf.xlu1 }
 0x232   : > { %818 = vxpose.xlu0.b32.cont [4/16] (narrow) %v338_v43, 64  ;;  %v644_v43 = vpop.trf.xlu0  ;;  %1071 = vst [vmem:[%s1637_s27 + $0x200] sm:$0xff] %v676_v42  ;;  %v423_v42 = vld [vmem:[%s1461_s24 + $0x8c0] sm:$0xff] }
 0x233   : > { %882 = vxpose.xlu2.b32.cont [4/16] (narrow) %v370_v44, 64  ;;  %1070 = vst [vmem:[%s1637_s27 + $0x1f8] sm:$0xff] %v644_v43  ;;  %v365_v44 = vld [vmem:[%s1461_s24 + $0x6f0] sm:$0xff]  ;;  %v709_v47 = vpop.trf.xlu2 }
 0x234   : > { %1075 = vst [vmem:[%s1637_s27 + $0x220] sm:$0xff] %v709_v47  ;;  %v392_v47 = vld [vmem:[%s1461_s24 + $0x7c8] sm:$0xff] }
 0x239   : > { %851 = vxpose.xlu1.b32.cont [5/16] (narrow) %v355_v48, 64  ;;  %v677_v48 = vpop.trf.xlu1 }
 0x23a   : > { %819 = vxpose.xlu0.b32.cont [5/16] (narrow) %v339_v49, 64  ;;  %v645_v49 = vpop.trf.xlu0  ;;  %1074 = vst [vmem:[%s1637_s27 + $0x218] sm:$0xff] %v677_v48  ;;  %v424_v48 = vld [vmem:[%s1461_s24 + $0x8c8] sm:$0xff] }
 0x23b   : > { %883 = vxpose.xlu2.b32.cont [5/16] (narrow) %v371_v50, 64  ;;  %1073 = vst [vmem:[%s1637_s27 + $0x210] sm:$0xff] %v645_v49  ;;  %v366_v50 = vld [vmem:[%s1461_s24 + $0x6f8] sm:$0xff]  ;;  %v710_v53 = vpop.trf.xlu2 }
 0x23c   : > { %1078 = vst [vmem:[%s1637_s27 + $0x238] sm:$0xff] %v710_v53  ;;  %v393_v53 = vld [vmem:[%s1461_s24 + $0x7d0] sm:$0xff] }
 0x241   : > { %852 = vxpose.xlu1.b32.cont [6/16] (narrow) %v356_v54, 64  ;;  %v678_v54 = vpop.trf.xlu1 }
 0x242   : > { %820 = vxpose.xlu0.b32.cont [6/16] (narrow) %v340_v55, 64  ;;  %v646_v55 = vpop.trf.xlu0  ;;  %1077 = vst [vmem:[%s1637_s27 + $0x230] sm:$0xff] %v678_v54  ;;  %v425_v54 = vld [vmem:[%s1461_s24 + $0x8d0] sm:$0xff] }
 0x243   : > { %884 = vxpose.xlu2.b32.cont [6/16] (narrow) %v372_v56, 64  ;;  %1076 = vst [vmem:[%s1637_s27 + $0x228] sm:$0xff] %v646_v55  ;;  %v399_v56 = vld [vmem:[%s1461_s24 + $0x800] sm:$0xff]  ;;  %v799_v59 = vpop.trf.xlu2 }
 0x244   : > { %1081 = vst [vmem:[%s1637_s27 + $0x250] sm:$0xff] %v799_v59  ;;  %v394_v59 = vld [vmem:[%s1461_s24 + $0x7d8] sm:$0xff] }
 0x249   : > { %853 = vxpose.xlu1.b32.cont [7/16] (narrow) %v357_v60, 64  ;;  %v767_v60 = vpop.trf.xlu1 }
 0x24a   : > { %821 = vxpose.xlu0.b32.cont [7/16] (narrow) %v341_v61, 64  ;;  %v735_v61 = vpop.trf.xlu0  ;;  %1080 = vst [vmem:[%s1637_s27 + $0x248] sm:$0xff] %v767_v60  ;;  %v426_v60 = vld [vmem:[%s1461_s24 + $0x8d8] sm:$0xff] }
 0x24b   : > { %885 = vxpose.xlu2.b32.cont [7/16] (narrow) %v373_v62, 64  ;;  %1079 = vst [vmem:[%s1637_s27 + $0x240] sm:$0xff] %v735_v61  ;;  %v400_v62 = vld [vmem:[%s1461_s24 + $0x808] sm:$0xff]  ;;  %v800_v1 = vpop.trf.xlu2 }
 0x24c   : > { %1084 = vst [vmem:[%s1637_s27 + $0x268] sm:$0xff] %v800_v1  ;;  %v395_v1 = vld [vmem:[%s1461_s24 + $0x7e0] sm:$0xff] }
 0x251   : > { %854 = vxpose.xlu1.b32.cont [8/16] (narrow) %v358_v2, 64  ;;  %v768_v2 = vpop.trf.xlu1 }
 0x252   : > { %822 = vxpose.xlu0.b32.cont [8/16] (narrow) %v342_v3, 64  ;;  %v736_v3 = vpop.trf.xlu0  ;;  %1083 = vst [vmem:[%s1637_s27 + $0x260] sm:$0xff] %v768_v2  ;;  %v427_v2 = vld [vmem:[%s1461_s24 + $0x8e0] sm:$0xff] }
 0x253   : > { %886 = vxpose.xlu2.b32.cont [8/16] (narrow) %v374_v4, 64  ;;  %1082 = vst [vmem:[%s1637_s27 + $0x258] sm:$0xff] %v736_v3  ;;  %v401_v4 = vld [vmem:[%s1461_s24 + $0x810] sm:$0xff]  ;;  %v801_v7 = vpop.trf.xlu2 }
 0x254   : > { %1087 = vst [vmem:[%s1637_s27 + $0x280] sm:$0xff] %v801_v7  ;;  %v396_v7 = vld [vmem:[%s1461_s24 + $0x7e8] sm:$0xff] }
 0x259   : > { %855 = vxpose.xlu1.b32.cont [9/16] (narrow) %v359_v8, 64  ;;  %v769_v8 = vpop.trf.xlu1 }
 0x25a   : > { %823 = vxpose.xlu0.b32.cont [9/16] (narrow) %v343_v9, 64  ;;  %v737_v9 = vpop.trf.xlu0  ;;  %1086 = vst [vmem:[%s1637_s27 + $0x278] sm:$0xff] %v769_v8  ;;  %v428_v8 = vld [vmem:[%s1461_s24 + $0x8e8] sm:$0xff] }
 0x25b   : > { %887 = vxpose.xlu2.b32.cont [9/16] (narrow) %v375_v10, 64  ;;  %1085 = vst [vmem:[%s1637_s27 + $0x270] sm:$0xff] %v737_v9  ;;  %v402_v10 = vld [vmem:[%s1461_s24 + $0x818] sm:$0xff]  ;;  %v802_v13 = vpop.trf.xlu2 }
 0x25c   : > { %1090 = vst [vmem:[%s1637_s27 + $0x298] sm:$0xff] %v802_v13  ;;  %v397_v13 = vld [vmem:[%s1461_s24 + $0x7f0] sm:$0xff] }
 0x261   : > { %856 = vxpose.xlu1.b32.cont [10/16] (narrow) %v360_v14, 64  ;;  %v770_v14 = vpop.trf.xlu1 }
 0x262   : > { %824 = vxpose.xlu0.b32.cont [10/16] (narrow) %v344_v15, 64  ;;  %v738_v15 = vpop.trf.xlu0  ;;  %1089 = vst [vmem:[%s1637_s27 + $0x290] sm:$0xff] %v770_v14  ;;  %v429_v14 = vld [vmem:[%s1461_s24 + $0x8f0] sm:$0xff] }
 0x263   : > { %888 = vxpose.xlu2.b32.cont [10/16] (narrow) %v376_v16, 64  ;;  %1088 = vst [vmem:[%s1637_s27 + $0x288] sm:$0xff] %v738_v15  ;;  %v403_v16 = vld [vmem:[%s1461_s24 + $0x820] sm:$0xff]  ;;  %v803_v19 = vpop.trf.xlu2 }
 0x264   : > { %1093 = vst [vmem:[%s1637_s27 + $0x2b0] sm:$0xff] %v803_v19  ;;  %v398_v19 = vld [vmem:[%s1461_s24 + $0x7f8] sm:$0xff] }
 0x269   : > { %857 = vxpose.xlu1.b32.cont [11/16] (narrow) %v361_v20, 64  ;;  %v771_v20 = vpop.trf.xlu1 }
 0x26a   : > { %825 = vxpose.xlu0.b32.cont [11/16] (narrow) %v345_v21, 64  ;;  %v739_v21 = vpop.trf.xlu0  ;;  %1092 = vst [vmem:[%s1637_s27 + $0x2a8] sm:$0xff] %v771_v20  ;;  %v430_v20 = vld [vmem:[%s1461_s24 + $0x8f8] sm:$0xff] }
 0x26b   : > { %889 = vxpose.xlu2.b32.cont [11/16] (narrow) %v377_v22, 64  ;;  %1091 = vst [vmem:[%s1637_s27 + $0x2a0] sm:$0xff] %v739_v21  ;;  %v404_v22 = vld [vmem:[%s1461_s24 + $0x828] sm:$0xff]  ;;  %v804_v25 = vpop.trf.xlu2 }
 0x26c   : > { %1096 = vst [vmem:[%s1637_s27 + $0x2c8] sm:$0xff] %v804_v25 }
 0x271   : > { %858 = vxpose.xlu1.b32.cont [12/16] (narrow) %v362_v26, 64  ;;  %v772_v26 = vpop.trf.xlu1 }
 0x272   : > { %826 = vxpose.xlu0.b32.cont [12/16] (narrow) %v346_v27, 64  ;;  %v740_v27 = vpop.trf.xlu0  ;;  %1095 = vst [vmem:[%s1637_s27 + $0x2c0] sm:$0xff] %v772_v26 }
 0x273   : > { %890 = vxpose.xlu2.b32.cont [12/16] (narrow) %v378_v28, 64  ;;  %1094 = vst [vmem:[%s1637_s27 + $0x2b8] sm:$0xff] %v740_v27  ;;  %v405_v28 = vld [vmem:[%s1461_s24 + $0x830] sm:$0xff]  ;;  %v805_v31 = vpop.trf.xlu2 }
 0x274   : > { %1099 = vst [vmem:[%s1637_s27 + $0x2e0] sm:$0xff] %v805_v31 }
 0x279   : > { %859 = vxpose.xlu1.b32.cont [13/16] (narrow) %v363_v32, 64  ;;  %v773_v32 = vpop.trf.xlu1 }
 0x27a   : > { %827 = vxpose.xlu0.b32.cont [13/16] (narrow) %v347_v33, 64  ;;  %v741_v33 = vpop.trf.xlu0  ;;  %1098 = vst [vmem:[%s1637_s27 + $0x2d8] sm:$0xff] %v773_v32 }
 0x27b   : > { %891 = vxpose.xlu2.b32.cont [13/16] (narrow) %v379_v34, 64  ;;  %1097 = vst [vmem:[%s1637_s27 + $0x2d0] sm:$0xff] %v741_v33  ;;  %v406_v34 = vld [vmem:[%s1461_s24 + $0x838] sm:$0xff]  ;;  %v806_v37 = vpop.trf.xlu2 }
 0x27c   : > { %1102 = vst [vmem:[%s1637_s27 + $0x2f8] sm:$0xff] %v806_v37 }
 0x281   : > { %860 = vxpose.xlu1.b32.cont [14/16] (narrow) %v364_v38, 64  ;;  %v774_v38 = vpop.trf.xlu1 }
 0x282   : > { %828 = vxpose.xlu0.b32.cont [14/16] (narrow) %v348_v39, 64  ;;  %v742_v39 = vpop.trf.xlu0  ;;  %1101 = vst [vmem:[%s1637_s27 + $0x2f0] sm:$0xff] %v774_v38 }
 0x283   : > { %892 = vxpose.xlu2.b32.cont [14/16] (narrow) %v380_v40, 64  ;;  %1100 = vst [vmem:[%s1637_s27 + $0x2e8] sm:$0xff] %v742_v39  ;;  %v407_v40 = vld [vmem:[%s1461_s24 + $0x840] sm:$0xff] }
 0x289   : > { %861 = vxpose.xlu1.b32.cont [15/16] (narrow) %v365_v44, 64 }
 0x28a   : > { %829 = vxpose.xlu0.b32.cont [15/16] (narrow) %v349_v45, 64 }
 0x28b   : > { %893 = vxpose.xlu2.b32.cont [15/16] (narrow) %v381_v46, 64  ;;  %v408_v46 = vld [vmem:[%s1461_s24 + $0x848] sm:$0xff] }
 0x291   : > { %862 = vxpose.xlu1.b32.end [16/16] (narrow) %v366_v50, 64 }
 0x292   : > { %830 = vxpose.xlu0.b32.end [16/16] (narrow) %v350_v51, 64 }
 0x293   : > { %894 = vxpose.xlu2.b32.end [16/16] (narrow) %v382_v52, 64  ;;  %v409_v52 = vld [vmem:[%s1461_s24 + $0x850] sm:$0xff] }
 0x299   : > { %943 = vxpose.xlu1.b32.start [1/16] (narrow) %v399_v56, 64 }
 0x29a   : > { %911 = vxpose.xlu0.b32.start [1/16] (narrow) %v383_v57, 64 }
 0x29b   : > { %975 = vxpose.xlu2.b32.start [1/16] (narrow) %v415_v58, 64  ;;  %v410_v58 = vld [vmem:[%s1461_s24 + $0x858] sm:$0xff] }
 0x2a1   : > { %944 = vxpose.xlu1.b32.cont [2/16] (narrow) %v400_v62, 64 }
 0x2a2   : > { %912 = vxpose.xlu0.b32.cont [2/16] (narrow) %v384_v63, 64 }
 0x2a3   : > { %976 = vxpose.xlu2.b32.cont [2/16] (narrow) %v416_v0, 64  ;;  %v411_v0 = vld [vmem:[%s1461_s24 + $0x860] sm:$0xff] }
 0x2a9   : > { %945 = vxpose.xlu1.b32.cont [3/16] (narrow) %v401_v4, 64 }
 0x2aa   : > { %913 = vxpose.xlu0.b32.cont [3/16] (narrow) %v385_v5, 64 }
 0x2ab   : > { %977 = vxpose.xlu2.b32.cont [3/16] (narrow) %v417_v6, 64  ;;  %v412_v6 = vld [vmem:[%s1461_s24 + $0x868] sm:$0xff] }
 0x2b1   : > { %946 = vxpose.xlu1.b32.cont [4/16] (narrow) %v402_v10, 64 }
 0x2b2   : > { %914 = vxpose.xlu0.b32.cont [4/16] (narrow) %v386_v11, 64 }
 0x2b3   : > { %978 = vxpose.xlu2.b32.cont [4/16] (narrow) %v418_v12, 64  ;;  %v413_v12 = vld [vmem:[%s1461_s24 + $0x870] sm:$0xff] }
 0x2b4   : > { %v895_v43 = vpop.trf.xlu2 }
 0x2b5   : > { %1105 = vst [vmem:[%s1637_s27 + $0x310] sm:$0xff] %v895_v43 }
 0x2b9   : > { %947 = vxpose.xlu1.b32.cont [5/16] (narrow) %v403_v16, 64 }
 0x2ba   : > { %915 = vxpose.xlu0.b32.cont [5/16] (narrow) %v387_v17, 64 }
 0x2bb   : > { %979 = vxpose.xlu2.b32.cont [5/16] (narrow) %v419_v18, 64  ;;  %v414_v18 = vld [vmem:[%s1461_s24 + $0x878] sm:$0xff] }
 0x2bc   : > { %v896_v49 = vpop.trf.xlu2 }
 0x2bd   : > { %v863_v44 = vpop.trf.xlu1  ;;  %1108 = vst [vmem:[%s1637_s27 + $0x328] sm:$0xff] %v896_v49 }
 0x2be   : > { %v831_v45 = vpop.trf.xlu0  ;;  %1104 = vst [vmem:[%s1637_s27 + $0x308] sm:$0xff] %v863_v44 }
 0x2bf   : > { %1103 = vst [vmem:[%s1637_s27 + $0x300] sm:$0xff] %v831_v45 }
 0x2c1   : > { %948 = vxpose.xlu1.b32.cont [6/16] (narrow) %v404_v22, 64 }
 0x2c2   : > { %916 = vxpose.xlu0.b32.cont [6/16] (narrow) %v388_v23, 64 }
 0x2c3   : > { %980 = vxpose.xlu2.b32.cont [6/16] (narrow) %v420_v24, 64 }
 0x2c4   : > { %v897_v55 = vpop.trf.xlu2 }
 0x2c5   : > { %v864_v50 = vpop.trf.xlu1  ;;  %1111 = vst [vmem:[%s1637_s27 + $0x340] sm:$0xff] %v897_v55 }
 0x2c6   : > { %v832_v51 = vpop.trf.xlu0  ;;  %1107 = vst [vmem:[%s1637_s27 + $0x320] sm:$0xff] %v864_v50 }
 0x2c7   : > { %1106 = vst [vmem:[%s1637_s27 + $0x318] sm:$0xff] %v832_v51 }
 0x2c9   : > { %949 = vxpose.xlu1.b32.cont [7/16] (narrow) %v405_v28, 64 }
 0x2ca   : > { %917 = vxpose.xlu0.b32.cont [7/16] (narrow) %v389_v29, 64 }
 0x2cb   : > { %981 = vxpose.xlu2.b32.cont [7/16] (narrow) %v421_v30, 64 }
 0x2cc   : > { %v898_v61 = vpop.trf.xlu2 }
 0x2cd   : > { %v865_v56 = vpop.trf.xlu1  ;;  %1114 = vst [vmem:[%s1637_s27 + $0x358] sm:$0xff] %v898_v61 }
 0x2ce   : > { %v833_v57 = vpop.trf.xlu0  ;;  %1110 = vst [vmem:[%s1637_s27 + $0x338] sm:$0xff] %v865_v56 }
 0x2cf   : > { %1109 = vst [vmem:[%s1637_s27 + $0x330] sm:$0xff] %v833_v57 }
 0x2d1   : > { %950 = vxpose.xlu1.b32.cont [8/16] (narrow) %v406_v34, 64 }
 0x2d2   : > { %918 = vxpose.xlu0.b32.cont [8/16] (narrow) %v390_v35, 64 }
 0x2d3   : > { %982 = vxpose.xlu2.b32.cont [8/16] (narrow) %v422_v36, 64 }
 0x2d4   : > { %v899_v3 = vpop.trf.xlu2 }
 0x2d5   : > { %v866_v62 = vpop.trf.xlu1  ;;  %1117 = vst [vmem:[%s1637_s27 + $0x370] sm:$0xff] %v899_v3 }
 0x2d6   : > { %v834_v63 = vpop.trf.xlu0  ;;  %1113 = vst [vmem:[%s1637_s27 + $0x350] sm:$0xff] %v866_v62 }
 0x2d7   : > { %1112 = vst [vmem:[%s1637_s27 + $0x348] sm:$0xff] %v834_v63 }
 0x2d9   : > { %951 = vxpose.xlu1.b32.cont [9/16] (narrow) %v407_v40, 64 }
 0x2da   : > { %919 = vxpose.xlu0.b32.cont [9/16] (narrow) %v391_v41, 64 }
 0x2db   : > { %983 = vxpose.xlu2.b32.cont [9/16] (narrow) %v423_v42, 64 }
 0x2dc   : > { %v900_v9 = vpop.trf.xlu2 }
 0x2dd   : > { %v867_v4 = vpop.trf.xlu1  ;;  %1120 = vst [vmem:[%s1637_s27 + $0x388] sm:$0xff] %v900_v9 }
 0x2de   : > { %v835_v5 = vpop.trf.xlu0  ;;  %1116 = vst [vmem:[%s1637_s27 + $0x368] sm:$0xff] %v867_v4 }
 0x2df   : > { %1115 = vst [vmem:[%s1637_s27 + $0x360] sm:$0xff] %v835_v5 }
 0x2e1   : > { %952 = vxpose.xlu1.b32.cont [10/16] (narrow) %v408_v46, 64 }
 0x2e2   : > { %920 = vxpose.xlu0.b32.cont [10/16] (narrow) %v392_v47, 64 }
 0x2e3   : > { %984 = vxpose.xlu2.b32.cont [10/16] (narrow) %v424_v48, 64 }
 0x2e4   : > { %v901_v15 = vpop.trf.xlu2 }
 0x2e5   : > { %v868_v10 = vpop.trf.xlu1  ;;  %1123 = vst [vmem:[%s1637_s27 + $0x3a0] sm:$0xff] %v901_v15 }
 0x2e6   : > { %v836_v11 = vpop.trf.xlu0  ;;  %1119 = vst [vmem:[%s1637_s27 + $0x380] sm:$0xff] %v868_v10 }
 0x2e7   : > { %1118 = vst [vmem:[%s1637_s27 + $0x378] sm:$0xff] %v836_v11 }
 0x2e9   : > { %953 = vxpose.xlu1.b32.cont [11/16] (narrow) %v409_v52, 64 }
 0x2ea   : > { %921 = vxpose.xlu0.b32.cont [11/16] (narrow) %v393_v53, 64 }
 0x2eb   : > { %985 = vxpose.xlu2.b32.cont [11/16] (narrow) %v425_v54, 64 }
 0x2ec   : > { %v902_v21 = vpop.trf.xlu2 }
 0x2ed   : > { %v869_v16 = vpop.trf.xlu1  ;;  %1126 = vst [vmem:[%s1637_s27 + $0x3b8] sm:$0xff] %v902_v21 }
 0x2ee   : > { %v837_v17 = vpop.trf.xlu0  ;;  %1122 = vst [vmem:[%s1637_s27 + $0x398] sm:$0xff] %v869_v16 }
 0x2ef   : > { %1121 = vst [vmem:[%s1637_s27 + $0x390] sm:$0xff] %v837_v17 }
 0x2f1   : > { %954 = vxpose.xlu1.b32.cont [12/16] (narrow) %v410_v58, 64 }
 0x2f2   : > { %922 = vxpose.xlu0.b32.cont [12/16] (narrow) %v394_v59, 64 }
 0x2f3   : > { %986 = vxpose.xlu2.b32.cont [12/16] (narrow) %v426_v60, 64 }
 0x2f5   : > { %v870_v22 = vpop.trf.xlu1 }
 0x2f6   : > { %v838_v23 = vpop.trf.xlu0  ;;  %1125 = vst [vmem:[%s1637_s27 + $0x3b0] sm:$0xff] %v870_v22 }
 0x2f7   : > { %1124 = vst [vmem:[%s1637_s27 + $0x3a8] sm:$0xff] %v838_v23 }
 0x2f9   : > { %955 = vxpose.xlu1.b32.cont [13/16] (narrow) %v411_v0, 64 }
 0x2fa   : > { %923 = vxpose.xlu0.b32.cont [13/16] (narrow) %v395_v1, 64 }
 0x2fb   : > { %987 = vxpose.xlu2.b32.cont [13/16] (narrow) %v427_v2, 64 }
 0x301   : > { %956 = vxpose.xlu1.b32.cont [14/16] (narrow) %v412_v6, 64 }
 0x302   : > { %924 = vxpose.xlu0.b32.cont [14/16] (narrow) %v396_v7, 64 }
 0x303   : > { %988 = vxpose.xlu2.b32.cont [14/16] (narrow) %v428_v8, 64 }
 0x309   : > { %957 = vxpose.xlu1.b32.cont [15/16] (narrow) %v413_v12, 64 }
 0x30a   : > { %925 = vxpose.xlu0.b32.cont [15/16] (narrow) %v397_v13, 64 }
 0x30b   : > { %989 = vxpose.xlu2.b32.cont [15/16] (narrow) %v429_v14, 64 }
 0x311   : > { %958 = vxpose.xlu1.b32.end [16/16] (narrow) %v414_v18, 64 }
 0x312   : > { %926 = vxpose.xlu0.b32.end [16/16] (narrow) %v398_v19, 64 }
 0x313   : > { %990 = vxpose.xlu2.b32.end [16/16] (narrow) %v430_v20, 64 }
 0x334   : > { %v991_v24 = vpop.trf.xlu2 }
 0x335   : > { %1129 = vst [vmem:[%s1637_s27 + $0x3d0] sm:$0xff] %v991_v24 }
 0x33c   : > { %v992_v25 = vpop.trf.xlu2 }
 0x33d   : > { %1132 = vst [vmem:[%s1637_s27 + $0x3e8] sm:$0xff] %v992_v25  ;;  %v959_v26 = vpop.trf.xlu1 }
 0x33e   : > { %v927_v27 = vpop.trf.xlu0  ;;  %1128 = vst [vmem:[%s1637_s27 + $0x3c8] sm:$0xff] %v959_v26 }
 0x33f   : > { %1127 = vst [vmem:[%s1637_s27 + $0x3c0] sm:$0xff] %v927_v27 }
 0x344   : > { %v993_v28 = vpop.trf.xlu2 }
 0x345   : > { %1135 = vst [vmem:[%s1637_s27 + $0x400] sm:$0xff] %v993_v28  ;;  %v960_v29 = vpop.trf.xlu1 }
 0x346   : > { %v928_v30 = vpop.trf.xlu0  ;;  %1131 = vst [vmem:[%s1637_s27 + $0x3e0] sm:$0xff] %v960_v29 }
 0x347   : > { %1130 = vst [vmem:[%s1637_s27 + $0x3d8] sm:$0xff] %v928_v30 }
 0x34c   : > { %v994_v31 = vpop.trf.xlu2 }
 0x34d   : > { %1138 = vst [vmem:[%s1637_s27 + $0x418] sm:$0xff] %v994_v31  ;;  %v961_v32 = vpop.trf.xlu1 }
 0x34e   : > { %v929_v33 = vpop.trf.xlu0  ;;  %1134 = vst [vmem:[%s1637_s27 + $0x3f8] sm:$0xff] %v961_v32 }
 0x34f   : > { %1133 = vst [vmem:[%s1637_s27 + $0x3f0] sm:$0xff] %v929_v33 }
 0x354   : > { %v995_v34 = vpop.trf.xlu2 }
 0x355   : > { %1141 = vst [vmem:[%s1637_s27 + $0x430] sm:$0xff] %v995_v34  ;;  %v962_v35 = vpop.trf.xlu1 }
 0x356   : > { %v930_v36 = vpop.trf.xlu0  ;;  %1137 = vst [vmem:[%s1637_s27 + $0x410] sm:$0xff] %v962_v35 }
 0x357   : > { %1136 = vst [vmem:[%s1637_s27 + $0x408] sm:$0xff] %v930_v36 }
 0x35c   : > { %v996_v37 = vpop.trf.xlu2 }
 0x35d   : > { %1144 = vst [vmem:[%s1637_s27 + $0x448] sm:$0xff] %v996_v37  ;;  %v963_v38 = vpop.trf.xlu1 }
 0x35e   : > { %v931_v39 = vpop.trf.xlu0  ;;  %1140 = vst [vmem:[%s1637_s27 + $0x428] sm:$0xff] %v963_v38 }
 0x35f   : > { %1139 = vst [vmem:[%s1637_s27 + $0x420] sm:$0xff] %v931_v39 }
 0x364   : > { %v997_v40 = vpop.trf.xlu2 }
 0x365   : > { %1147 = vst [vmem:[%s1637_s27 + $0x460] sm:$0xff] %v997_v40  ;;  %v964_v41 = vpop.trf.xlu1 }
 0x366   : > { %v932_v42 = vpop.trf.xlu0  ;;  %1143 = vst [vmem:[%s1637_s27 + $0x440] sm:$0xff] %v964_v41 }
 0x367   : > { %1142 = vst [vmem:[%s1637_s27 + $0x438] sm:$0xff] %v932_v42 }
 0x36c   : > { %v998_v43 = vpop.trf.xlu2 }
 0x36d   : > { %1150 = vst [vmem:[%s1637_s27 + $0x478] sm:$0xff] %v998_v43  ;;  %v965_v44 = vpop.trf.xlu1 }
 0x36e   : > { %v933_v45 = vpop.trf.xlu0  ;;  %1146 = vst [vmem:[%s1637_s27 + $0x458] sm:$0xff] %v965_v44 }
 0x36f   : > { %1145 = vst [vmem:[%s1637_s27 + $0x450] sm:$0xff] %v933_v45 }
 0x375   : > { %v966_v46 = vpop.trf.xlu1 }
 0x376   : > { %v934_v47 = vpop.trf.xlu0  ;;  %1149 = vst [vmem:[%s1637_s27 + $0x470] sm:$0xff] %v966_v46 }
 0x377   : > { %1148 = vst [vmem:[%s1637_s27 + $0x468] sm:$0xff] %v934_v47 }
 0x378   : > { %1337 = shalt.err (!%p1334_p5)
}
 0x379   : > { %s1390_s22 = smov 384   ;;  %s1391_s23 = smov 24  }
 0x37a   : > { %1252 = dma.vmem_to_hbm [thread:$0]  (%p1442_p4), %s1167_s3, 18432, %s1169_s4, %s1152_s5, %s1390_s22, %s1390_s22, %s1391_s23  }
 0x37b PF: > { %p1259_p6 = scmp.ge.s32.totalorder %s1388_s11, 2  ;;  %s1183_s24 = sand.u32 1, %s1368_s6  }
 0x37c   : > { %s1184_s25 = scalar_lea.sflag [#allocation3], %s1183_s24 }
 0x37d   : > { %p1255_p7 = pnand %p1259_p6, %p1449_p8 }
 0x37f   : > { %p1256_p9 = pneg %p1255_p7 }
 0x381   : > { %1363 = dma.done.wait (%p1256_p9), %s1184_s25, 18432  }
 0x382   : > { %1365 = vsyncadd (%p1256_p9), %s1184_s25, 4294948864  ;;  %s14_s11 = sadd.s32 1, %s1388_s11   ;;  %s1943_s6 = smov %s1372_s7 }
 0x383   : > { %p11_p10 = scmp.ge.s32.totalorder %s14_s11, 4   ;;  %s1944_s7 = smov %s1376_s8 }
 0x384   : > { %s1945_s8 = smov %s1455_s19  ;;  %s1946_s9 = smov %s1384_s10 }
 0x385   : > { %s1947_s10 = smov %s1949_s14  ;;  %13 = sbr.rel (!%p11_p10) target bundleno = 4 (0x4), region = 59 }
 0x38a   :  { %1190 = vsyncpa [#allocation3], 1 }
 0x38b   :  { %1192 = vsyncpa [#allocation3 + $0x1], 1 }

</bundles_post_ra>
